<compile_context>
chip_gen: v7x
topology: tpu7x:2x2x1
jax: 0.10.0
libtpu: 0.0.40
codegen_flags: <defaults>
</compile_context>

<pallas_src>
import functools

import jax
import jax.numpy as jnp
from jax import lax
from jax.experimental import pallas as pl
from jax.experimental.pallas import tpu as pltpu


# ----------------------------------------------------------------------------
# Fused kernel: backbone GEMM + ReLU -> fused head GEMM -> inference decode
# ----------------------------------------------------------------------------
def _reppoint_fused_kernel(pm_ref, wbb_ref, bbb_ref, whd_ref, bhd_ref, out_ref,
                           *, nc, p, sentinel):
    # --- backbone: 3x3 conv as im2col GEMM (pixel norm pre-folded) + ReLU ----
    feat = jnp.dot(pm_ref[...], wbb_ref[...], preferred_element_type=jnp.float32)
    feat = jnp.maximum(feat + bbb_ref[...], 0.0)

    # --- fused heads: one lane-dense N=128 GEMM over [cls | dx | dy | 0-pad] -
    # (pts_refine = pts_init + refine_residual is linear and already folded
    #  into whd/bhd, so only the final refined offsets are produced.)
    y = jnp.dot(feat.astype(jnp.bfloat16), whd_ref[...],
                preferred_element_type=jnp.float32) + bhd_ref[...]

    # --- (1,128) lane iota + masks, broadcast inside the wheres (low vreg/VPU)
    lane = lax.broadcasted_iota(jnp.int32, (1, y.shape[-1]), 1)
    lane_f = lane.astype(jnp.float32)
    is_cls = lane < nc
    is_dx = (lane >= nc) & (lane < nc + p)
    is_dy = (lane >= nc + p) & (lane < nc + 2 * p)

    neg_inf = jnp.float32(-jnp.inf)
    pos_inf = jnp.float32(jnp.inf)

    # --- class decode: scores = sigmoid(max logit), labels = first argmax ----
    m = jnp.max(jnp.where(is_cls, y, neg_inf), axis=-1, keepdims=True)
    labels = jnp.min(jnp.where(is_cls & (y >= m), lane_f, jnp.float32(sentinel)),
                     axis=-1, keepdims=True)          # torch.argmax tie-break
    scores = 1.0 / (1.0 + jnp.exp(-m))                # exact sigmoid

    # --- RepPoints min-max transform -> raw bbox offsets (XLU reductions) ----
    x_min = jnp.min(jnp.where(is_dx, y, pos_inf), axis=-1, keepdims=True)
    x_max = jnp.max(jnp.where(is_dx, y, neg_inf), axis=-1, keepdims=True)
    y_min = jnp.min(jnp.where(is_dy, y, pos_inf), axis=-1, keepdims=True)
    y_max = jnp.max(jnp.where(is_dy, y, neg_inf), axis=-1, keepdims=True)

    pad = jnp.zeros_like(m)
    # packed decode slab: [dx1, dy1, dx2, dy2, score, label, 0, 0]
    # (grid centers are added in the wrapper; (tm,8) masked store accepted.)
    out_ref[...] = jnp.concatenate(
        [x_min, y_min, x_max, y_max, scores, labels, pad, pad], axis=-1)


# ----------------------------------------------------------------------------
# Parameter init (deterministic, synthetic backbone + RepPoints head)
#   w_bb rows are tap-major / channel-minor (matches _im2col_3x3_same).
#   point-head columns are [dx(0..P-1) | dy(0..P-1)] contiguous (not interleaved).
# ----------------------------------------------------------------------------
def init_params(key, in_ch, hidden, num_classes, num_points):
    k = jax.random.split(key, 4)

    def w(kk, shape, fan_in):
        return jax.random.normal(kk, shape, jnp.float32) / jnp.sqrt(jnp.float32(fan_in))

    return {
        "w_bb": w(k[0], (in_ch * 9, hidden), in_ch * 9),      # 3x3 conv, im2col form
        "b_bb": jnp.zeros((hidden,), jnp.float32),
        "w_cls": w(k[1], (hidden, num_classes), hidden),      # 1x1 cls conv
        "b_cls": jnp.full((num_classes,), -2.0, jnp.float32),
        "w_init": w(k[2], (hidden, 2 * num_points), hidden),    # 1x1 pts_init conv
        "b_init": jnp.zeros((2 * num_points,), jnp.float32),
        "w_refine": w(k[3], (hidden, 2 * num_points), hidden),  # 1x1 pts_refine conv
        "b_refine": jnp.zeros((2 * num_points,), jnp.float32),
    }


# ----------------------------------------------------------------------------
# Exact algebraic folds done once, outside the hot path:
#   * (x - mean)/std  -> scale backbone weight rows by 1/std, shift the bias.
#   * refine = init + residual -> sum the two point-head weight/bias blocks.
#   * concatenate cls + points heads along N, pad to a lane-dense 128.
# No K padding of w_bb: pm stays (M, 9*C) in HBM; Mosaic lane-pads in VMEM.
# ----------------------------------------------------------------------------
def fold_and_fuse_params(params, pixel_mean, pixel_std, *,
                         num_classes, num_points, head_pad=128):
    assert num_classes + 2 * num_points <= head_pad
    w_bb = params["w_bb"].astype(jnp.float32)
    hidden = w_bb.shape[1]

    inv_std = (1.0 / pixel_std).astype(jnp.float32)             # (C,)
    scale_rows = jnp.tile(inv_std, 9)                           # tap-major/chan-minor
    shift_rows = jnp.tile(-pixel_mean * inv_std, 9)
    w_bb_f = w_bb * scale_rows[:, None]
    b_bb_f = params["b_bb"] + shift_rows @ w_bb                 # (hidden,)

    # fuse heads: [cls | dx_refined | dy_refined], padded to head_pad lanes
    w_pts = params["w_init"] + params["w_refine"]               # (hidden, 2P)
    b_pts = params["b_init"] + params["b_refine"]
    w_hd = jnp.concatenate([params["w_cls"], w_pts], axis=1)
    b_hd = jnp.concatenate([params["b_cls"], b_pts], axis=0)
    n = w_hd.shape[1]
    w_hd = jnp.pad(w_hd, ((0, 0), (0, head_pad - n)))
    b_hd = jnp.pad(b_hd, ((0, head_pad - n),))

    return {
        "w_bb": w_bb_f.astype(jnp.bfloat16),                    # (9*C, hidden)
        "b_bb": b_bb_f.reshape(1, hidden).astype(jnp.float32),
        "w_hd": w_hd.astype(jnp.bfloat16),                      # (hidden, head_pad)
        "b_hd": b_hd.reshape(1, head_pad).astype(jnp.float32),
    }


# ----------------------------------------------------------------------------
# Glue (XLA): channels-last im2col (bf16) and tile-size selection
# ----------------------------------------------------------------------------
def _im2col_3x3_same(x_nhwc):
    B, H, W, C = x_nhwc.shape
    xp = jnp.pad(x_nhwc, ((0, 0), (1, 1), (1, 1), (0, 0)))
    taps = [xp[:, dy:dy + H, dx:dx + W, :] for dy in range(3) for dx in range(3)]
    return jnp.concatenate(taps, axis=-1)                       # (B, H, W, 9*C)


def _pick_tile_rows(total_rows, tm_max=256):
    """Row tile: must divide total_rows, multiple of 8.  Preference order:
    even number of grid steps (v7x megacore balance), multiple-of-16 rows
    (bf16 sublane packing, v5e), then the largest tile (DMA efficiency).
    tm<=256 keeps the (tm,128) f32 decode slab at <=32 vregs (no spills)."""
    assert total_rows % 8 == 0, "B*H*W must be a multiple of 8 for TPU sublane tiling"
    start = min(tm_max, total_rows)
    start -= start % 8
    best, best_key = None, None
    for cand in range(start, 0, -8):
        if total_rows % cand:
            continue
        steps = total_rows // cand
        key = (steps % 2 == 0, cand % 16 == 0, cand)
        if best_key is None or key > best_key:
            best, best_key = cand, key
    return best


# ----------------------------------------------------------------------------
# Forward wrapper (glue in JAX, all compute in one Pallas kernel)
# ----------------------------------------------------------------------------
def reppoint_v1_forward(image, fused_params, *, num_classes=80, num_points=9,
                        tile_rows_max=256, head_pad=128):
    B, C, H, W = image.shape
    A = H * W
    M = B * A
    hidden = fused_params["w_bb"].shape[1]
    kdim = fused_params["w_bb"].shape[0]                        # 9*C, un-padded

    # channels-last, bf16 BEFORE im2col so the patch buffer (the dominant HBM
    # stream) is half the bytes; pixel norm is folded into w_bb so raw pixels
    # go straight in.  TODO(synk): in-kernel halo-row conv would remove the
    # remaining im2col expansion entirely.
    x = jnp.transpose(image, (0, 2, 3, 1)).astype(jnp.bfloat16)
    pm = _im2col_3x3_same(x).reshape(M, 9 * C)                  # (M, 27) bf16
    assert pm.shape[1] == kdim

    tm = _pick_tile_rows(M, tile_rows_max)
    grid = (M // tm,)

    kernel = functools.partial(_reppoint_fused_kernel,
                               nc=num_classes, p=num_points, sentinel=head_pad)
    decoded = pl.pallas_call(
        kernel,
        out_shape=jax.ShapeDtypeStruct((M, 8), jnp.float32),
        grid_spec=pltpu.PrefetchScalarGridSpec(
            num_scalar_prefetch=0,
            grid=grid,
            in_specs=[
                pl.BlockSpec((tm, kdim), lambda i: (i, 0)),            # patches
                pl.BlockSpec((kdim, hidden), lambda i: (0, 0)),        # w_bb (resident)
                pl.BlockSpec((1, hidden), lambda i: (0, 0)),           # b_bb
                pl.BlockSpec((hidden, head_pad), lambda i: (0, 0)),    # w_hd (resident)
                pl.BlockSpec((1, head_pad), lambda i: (0, 0)),         # b_hd
            ],
            out_specs=pl.BlockSpec((tm, 8), lambda i: (i, 0)),
        ),
        compiler_params=pltpu.CompilerParams(
            dimension_semantics=("parallel",),          # megacore-shardable rows
            vmem_limit_bytes=32 * 1024 * 1024,          # working set <1 MiB; safe on v7x's 64 MiB
        ),
    )(pm, fused_params["w_bb"], fused_params["b_bb"],
      fused_params["w_hd"], fused_params["b_hd"])

    # grid-center add done here (one tiny lane-dense op) instead of shipping
    # two (tm,1) lane-sparse streams into the kernel every step.
    ys, xs = jnp.meshgrid(jnp.arange(H, dtype=jnp.float32),
                          jnp.arange(W, dtype=jnp.float32), indexing="ij")
    centers = jnp.stack([xs.reshape(-1), ys.reshape(-1),
                         xs.reshape(-1), ys.reshape(-1)], axis=-1)     # (A, 4)

    raw = decoded.reshape(B, A, 8)
    bbox = raw[..., 0:4] + centers[None, :, :]                 # x1, y1, x2, y2
    scores = raw[..., 4]                                       # sigmoid(max logit)
    labels = raw[..., 5].astype(jnp.int32)                     # argmax class
    return labels, scores, bbox


# ----------------------------------------------------------------------------
if __name__ == "__main__":
    key = jax.random.PRNGKey(0)
    k_img, k_par = jax.random.split(key)

    B, C, H, W = 2, 3, 16, 16
    num_classes, num_points, hidden = 80, 9, 32

    image = jax.random.uniform(k_img, (B, C, H, W), jnp.float32) * 255.0
    pixel_mean = jnp.array([103.530, 116.280, 123.675], jnp.float32)
    pixel_std = jnp.array([57.375, 57.120, 58.395], jnp.float32)

    params = init_params(k_par, C, hidden, num_classes, num_points)
    fused = fold_and_fuse_params(params, pixel_mean, pixel_std,
                                 num_classes=num_classes, num_points=num_points)

    fwd = jax.jit(functools.partial(reppoint_v1_forward,
                                    num_classes=num_classes,
                                    num_points=num_points))
    labels, scores, bbox = fwd(image, fused)
    jax.block_until_ready((labels, scores, bbox))

    assert labels.shape == (B, H * W) and labels.dtype == jnp.int32
    assert scores.shape == (B, H * W)
    assert bbox.shape == (B, H * W, 4)
    assert bool(jnp.all((labels >= 0) & (labels < num_classes)))
    assert bool(jnp.all((scores > 0.0) & (scores <= 1.0)))
    assert bool(jnp.all(bbox[..., 2] >= bbox[..., 0]))
    assert bool(jnp.all(bbox[..., 3] >= bbox[..., 1]))
    print("KERNEL_OK")
</pallas_src>

<mosaic_0001>
module attributes {stable_mosaic.version = 11 : i64} {
  func.func @_reppoint_fused_kernel(%arg0: i32, %arg1: memref<256x27xbf16, #tpu.memory_space<vmem>>, %arg2: memref<27x32xbf16, #tpu.memory_space<vmem>>, %arg3: memref<1x32xf32, #tpu.memory_space<vmem>>, %arg4: memref<32x128xbf16, #tpu.memory_space<vmem>>, %arg5: memref<1x128xf32, #tpu.memory_space<vmem>>, %arg6: memref<256x8xf32, #tpu.memory_space<vmem>>) attributes {dimension_semantics = [#tpu.dimension_semantics<parallel>], iteration_bounds = array<i64: 2>, scalar_prefetch = 0 : i64, scratch_operands = 0 : i64, tpu.core_type = #tpu.core_type<tc>, window_params = [{transform_indices = @transform_0, window_bounds = array<i64: 256, 27>}, {pipeline_mode = #tpu.pipeline_mode<synchronous>, transform_indices = @transform_1, window_bounds = array<i64: 27, 32>}, {pipeline_mode = #tpu.pipeline_mode<synchronous>, transform_indices = @transform_2, window_bounds = array<i64: 1, 32>}, {pipeline_mode = #tpu.pipeline_mode<synchronous>, transform_indices = @transform_3, window_bounds = array<i64: 32, 128>}, {pipeline_mode = #tpu.pipeline_mode<synchronous>, transform_indices = @transform_4, window_bounds = array<i64: 1, 128>}, {transform_indices = @transform_5, window_bounds = array<i64: 256, 8>}]} {
    %c0 = arith.constant 0 : index
    %c0_0 = arith.constant 0 : index
    %0 = vector.load %arg1[%c0, %c0_0] : memref<256x27xbf16, #tpu.memory_space<vmem>>, vector<256x27xbf16>
    %c0_1 = arith.constant 0 : index
    %c0_2 = arith.constant 0 : index
    %1 = vector.load %arg2[%c0_1, %c0_2] : memref<27x32xbf16, #tpu.memory_space<vmem>>, vector<27x32xbf16>
    %cst = arith.constant dense<0.000000e+00> : vector<256x32xf32>
    %2 = tpu.matmul %0, %1, %cst {dimension_numbers = #tpu.dot_dimension_numbers<[1], [0], [0], [1], [0, 0, 1, 1], [], []>} : vector<256x27xbf16>, vector<27x32xbf16>, vector<256x32xf32> -> vector<256x32xf32>
    %c0_3 = arith.constant 0 : index
    %c0_4 = arith.constant 0 : index
    %3 = vector.load %arg3[%c0_3, %c0_4] : memref<1x32xf32, #tpu.memory_space<vmem>>, vector<1x32xf32>
    %4 = vector.broadcast %3 : vector<1x32xf32> to vector<256x32xf32>
    %5 = arith.addf %2, %4 : vector<256x32xf32>
    %cst_5 = arith.constant 0.000000e+00 : f32
    %6 = vector.broadcast %cst_5 : f32 to vector<256x32xf32>
    %7 = arith.maximumf %5, %6 : vector<256x32xf32>
    %8 = arith.truncf %7 : vector<256x32xf32> to vector<256x32xbf16>
    %c0_6 = arith.constant 0 : index
    %c0_7 = arith.constant 0 : index
    %9 = vector.load %arg4[%c0_6, %c0_7] : memref<32x128xbf16, #tpu.memory_space<vmem>>, vector<32x128xbf16>
    %cst_8 = arith.constant dense<0.000000e+00> : vector<256x128xf32>
    %10 = tpu.matmul %8, %9, %cst_8 {dimension_numbers = #tpu.dot_dimension_numbers<[1], [0], [0], [1], [0, 0, 1, 1], [], []>} : vector<256x32xbf16>, vector<32x128xbf16>, vector<256x128xf32> -> vector<256x128xf32>
    %c0_9 = arith.constant 0 : index
    %c0_10 = arith.constant 0 : index
    %11 = vector.load %arg5[%c0_9, %c0_10] : memref<1x128xf32, #tpu.memory_space<vmem>>, vector<1x128xf32>
    %12 = vector.broadcast %11 : vector<1x128xf32> to vector<256x128xf32>
    %13 = arith.addf %10, %12 : vector<256x128xf32>
    %14 = tpu.iota {dimensions = array<i32: 1>} : vector<1x128xi32>
    %15 = arith.sitofp %14 : vector<1x128xi32> to vector<1x128xf32>
    %c80_i32 = arith.constant 80 : i32
    %16 = vector.broadcast %c80_i32 : i32 to vector<1x128xi32>
    %17 = arith.cmpi slt, %14, %16 : vector<1x128xi32>
    %c80_i32_11 = arith.constant 80 : i32
    %18 = vector.broadcast %c80_i32_11 : i32 to vector<1x128xi32>
    %19 = arith.cmpi sge, %14, %18 : vector<1x128xi32>
    %c89_i32 = arith.constant 89 : i32
    %20 = vector.broadcast %c89_i32 : i32 to vector<1x128xi32>
    %21 = arith.cmpi slt, %14, %20 : vector<1x128xi32>
    %22 = arith.andi %19, %21 : vector<1x128xi1>
    %c89_i32_12 = arith.constant 89 : i32
    %23 = vector.broadcast %c89_i32_12 : i32 to vector<1x128xi32>
    %24 = arith.cmpi sge, %14, %23 : vector<1x128xi32>
    %c98_i32 = arith.constant 98 : i32
    %25 = vector.broadcast %c98_i32 : i32 to vector<1x128xi32>
    %26 = arith.cmpi slt, %14, %25 : vector<1x128xi32>
    %27 = arith.andi %24, %26 : vector<1x128xi1>
    %cst_13 = arith.constant 0xFF800000 : f32
    %28 = vector.shape_cast %17 : vector<1x128xi1> to vector<1x128xi1>
    %29 = vector.broadcast %28 : vector<1x128xi1> to vector<256x128xi1>
    %30 = vector.broadcast %cst_13 : f32 to vector<256x128xf32>
    %31 = arith.select %29, %13, %30 : vector<256x128xi1>, vector<256x128xf32>
    %cst_14 = arith.constant dense<0xFF800000> : vector<256xf32>
    %32 = vector.multi_reduction <maximumf>, %31, %cst_14 [1] : vector<256x128xf32> to vector<256xf32>
    %33 = vector.shape_cast %32 : vector<256xf32> to vector<256x1xf32>
    %34 = vector.broadcast %33 : vector<256x1xf32> to vector<256x128xf32>
    %35 = arith.cmpf oge, %13, %34 : vector<256x128xf32>
    %36 = vector.broadcast %17 : vector<1x128xi1> to vector<256x128xi1>
    %37 = arith.andi %36, %35 : vector<256x128xi1>
    %cst_15 = arith.constant 1.280000e+02 : f32
    %38 = vector.shape_cast %15 : vector<1x128xf32> to vector<1x128xf32>
    %39 = vector.broadcast %38 : vector<1x128xf32> to vector<256x128xf32>
    %40 = vector.broadcast %cst_15 : f32 to vector<256x128xf32>
    %41 = arith.select %37, %39, %40 : vector<256x128xi1>, vector<256x128xf32>
    %cst_16 = arith.constant dense<0x7F800000> : vector<256xf32>
    %42 = vector.multi_reduction <minimumf>, %41, %cst_16 [1] : vector<256x128xf32> to vector<256xf32>
    %43 = vector.shape_cast %42 : vector<256xf32> to vector<256x1xf32>
    %cst_17 = arith.constant 0.000000e+00 : f32
    %44 = vector.broadcast %cst_17 : f32 to vector<256x1xf32>
    %45 = arith.subf %44, %33 : vector<256x1xf32>
    %46 = math.exp %45 : vector<256x1xf32>
    %cst_18 = arith.constant 1.000000e+00 : f32
    %47 = vector.broadcast %cst_18 : f32 to vector<256x1xf32>
    %48 = arith.addf %47, %46 : vector<256x1xf32>
    %cst_19 = arith.constant 1.000000e+00 : f32
    %49 = vector.broadcast %cst_19 : f32 to vector<256x1xf32>
    %50 = arith.divf %49, %48 : vector<256x1xf32>
    %cst_20 = arith.constant 0x7F800000 : f32
    %51 = vector.shape_cast %22 : vector<1x128xi1> to vector<1x128xi1>
    %52 = vector.broadcast %51 : vector<1x128xi1> to vector<256x128xi1>
    %53 = vector.broadcast %cst_20 : f32 to vector<256x128xf32>
    %54 = arith.select %52, %13, %53 : vector<256x128xi1>, vector<256x128xf32>
    %cst_21 = arith.constant dense<0x7F800000> : vector<256xf32>
    %55 = vector.multi_reduction <minimumf>, %54, %cst_21 [1] : vector<256x128xf32> to vector<256xf32>
    %56 = vector.shape_cast %55 : vector<256xf32> to vector<256x1xf32>
    %cst_22 = arith.constant 0xFF800000 : f32
    %57 = vector.shape_cast %22 : vector<1x128xi1> to vector<1x128xi1>
    %58 = vector.broadcast %57 : vector<1x128xi1> to vector<256x128xi1>
    %59 = vector.broadcast %cst_22 : f32 to vector<256x128xf32>
    %60 = arith.select %58, %13, %59 : vector<256x128xi1>, vector<256x128xf32>
    %cst_23 = arith.constant dense<0xFF800000> : vector<256xf32>
    %61 = vector.multi_reduction <maximumf>, %60, %cst_23 [1] : vector<256x128xf32> to vector<256xf32>
    %62 = vector.shape_cast %61 : vector<256xf32> to vector<256x1xf32>
    %cst_24 = arith.constant 0x7F800000 : f32
    %63 = vector.shape_cast %27 : vector<1x128xi1> to vector<1x128xi1>
    %64 = vector.broadcast %63 : vector<1x128xi1> to vector<256x128xi1>
    %65 = vector.broadcast %cst_24 : f32 to vector<256x128xf32>
    %66 = arith.select %64, %13, %65 : vector<256x128xi1>, vector<256x128xf32>
    %cst_25 = arith.constant dense<0x7F800000> : vector<256xf32>
    %67 = vector.multi_reduction <minimumf>, %66, %cst_25 [1] : vector<256x128xf32> to vector<256xf32>
    %68 = vector.shape_cast %67 : vector<256xf32> to vector<256x1xf32>
    %cst_26 = arith.constant 0xFF800000 : f32
    %69 = vector.shape_cast %27 : vector<1x128xi1> to vector<1x128xi1>
    %70 = vector.broadcast %69 : vector<1x128xi1> to vector<256x128xi1>
    %71 = vector.broadcast %cst_26 : f32 to vector<256x128xf32>
    %72 = arith.select %70, %13, %71 : vector<256x128xi1>, vector<256x128xf32>
    %cst_27 = arith.constant dense<0xFF800000> : vector<256xf32>
    %73 = vector.multi_reduction <maximumf>, %72, %cst_27 [1] : vector<256x128xf32> to vector<256xf32>
    %74 = vector.shape_cast %73 : vector<256xf32> to vector<256x1xf32>
    %cst_28 = arith.constant 0.000000e+00 : f32
    %75 = vector.broadcast %cst_28 : f32 to vector<256x1xf32>
    %76 = tpu.concatenate %56, %68, %62, %74, %50, %43, %75, %75 in 1 : vector<256x1xf32>, vector<256x1xf32>, vector<256x1xf32>, vector<256x1xf32>, vector<256x1xf32>, vector<256x1xf32>, vector<256x1xf32>, vector<256x1xf32> -> vector<256x8xf32>
    %c0_29 = arith.constant 0 : index
    %c0_30 = arith.constant 0 : index
    %77 = vector.load %arg6[%c0_29, %c0_30] : memref<256x8xf32, #tpu.memory_space<vmem>>, vector<256x8xf32>
    tpu.vector_store %arg6[%c0_29, %c0_30], %76 {strides = array<i32>} : memref<256x8xf32, #tpu.memory_space<vmem>>, vector<256x8xf32>,
    return
  }
  func.func @transform_0(%arg0: i32) -> (i32, i32) {
    %c0_i32 = arith.constant 0 : i32
    %c0_i32_0 = arith.constant 0 : i32
    return %arg0, %c0_i32 : i32, i32
  }
  func.func @transform_1(%arg0: i32) -> (i32, i32) {
    %c0_i32 = arith.constant 0 : i32
    %c0_i32_0 = arith.constant 0 : i32
    %c0_i32_1 = arith.constant 0 : i32
    return %c0_i32, %c0_i32_0 : i32, i32
  }
  func.func @transform_2(%arg0: i32) -> (i32, i32) {
    %c0_i32 = arith.constant 0 : i32
    %c0_i32_0 = arith.constant 0 : i32
    %c0_i32_1 = arith.constant 0 : i32
    return %c0_i32, %c0_i32_0 : i32, i32
  }
  func.func @transform_3(%arg0: i32) -> (i32, i32) {
    %c0_i32 = arith.constant 0 : i32
    %c0_i32_0 = arith.constant 0 : i32
    %c0_i32_1 = arith.constant 0 : i32
    return %c0_i32, %c0_i32_0 : i32, i32
  }
  func.func @transform_4(%arg0: i32) -> (i32, i32) {
    %c0_i32 = arith.constant 0 : i32
    %c0_i32_0 = arith.constant 0 : i32
    %c0_i32_1 = arith.constant 0 : i32
    return %c0_i32, %c0_i32_0 : i32, i32
  }
  func.func @transform_5(%arg0: i32) -> (i32, i32) {
    %c0_i32 = arith.constant 0 : i32
    %c0_i32_0 = arith.constant 0 : i32
    return %arg0, %c0_i32 : i32, i32
  }
}

</mosaic_0001>

<bundles_post_ra>
// kernel: reppoint_v1_forward.1
= control target key start
LH: loop header
LB: loop body
LE: loop exit
PB: predicated region body
PF: predicated region fallthrough
CT: control target
= control target key end

     0   :  { %s2399_s18 = smov 0   ;;  %s3848_s0 = inlined_call_operand.vmem [shape: bf16[512,27], index: 0, kind: input, shape index: {}]   ;;  %s3849_s1 = inlined_call_operand.vmem [shape: bf16[27,32], index: 1, kind: input, shape index: {}]   ;;  %s3850_s2 = inlined_call_operand.vmem [shape: f32[1,32], index: 2, kind: input, shape index: {}]   ;;  %s3851_s3 = inlined_call_operand.vmem [shape: bf16[32,128], index: 3, kind: input, shape index: {}]   ;;  %s3852_s4 = inlined_call_operand.vmem [shape: f32[1,128], index: 4, kind: input, shape index: {}]   ;;  %s3853_s5 = inlined_call_operand.vmem [shape: f32[512,8], index: 5, kind: output, shape index: {}]  }
   0x1 LB: > { %s2029_s19 = sadd.s32 4294967295, %s2366_s18   ;;  %p2033_p0 = scmp.ge.s32.totalorder %s2366_s18, 1  ;;  %s2366_s18 = sphi %s2399_s18, %s15_s18  }
   0x2   : > { %p188_p1 = scmp.lt.s32.totalorder %s2366_s18, 3 }
   0x4   : > { %p189_p2 = pnand %p2033_p0, %p188_p1 }
   0x6   : > { %192 = sbr.rel (%p189_p2) target bundleno = 1054 (0x41e), region = 40 }
   0xd   : > { %v2211_v0 = vld [vmem:[%s3849_s1] sm:$0xff]   ;;  %vm412_vm0 = vcmask 1044480   ;;  %v2212_v1 = vld [vmem:[%s3849_s1 + $0x8] sm:$0x3f]   ;;  %vm413_vm1 = vcmask 1045504   ;;  %s2034_s24 = sshll.u32 %s2029_s19, 5 }
   0xe   : > { %2130 = vmatprep.subr.bf16.mxu0 %v2211_v0  ;;  %v2368_v2 = vmov 65535   ;;  %p217_p3 = scmp.lt.s32.totalorder %s2034_s24, 63  ;;  %vm363_vm2 = vcmask 220160   ;;  %v2225_v18 = vld [vmem:[%s3851_s3] sm:$0xff]   ;;  %v2226_v19 = vld [vmem:[%s3851_s3 + $0x8] sm:$0xff]   ;;  %vm651_vm3 = vcmask 261120  }
   0xf   : > { %2131 = vmatpush3.bf16.msra.mxu0 %v2211_v0  ;;  %v414_v3 = vsel %vm412_vm0, 4294967295, %v2368_v2  ;;  %2166 = vmatprep.subr.bf16.mxu1 %v2225_v18  ;;  %v2462_v24 = vld [vmem:[%s3850_s2] ss:$0 sm:$0xff]  ;;  %vm1709_vm11 = vcmask 7168   ;;  %vm1742_vm12 = vcmask 15360   ;;  %vm1775_vm13 = vcmask 23552  }
  0x10   : > { %v415_v4 = vsel %vm413_vm1, %v414_v3, 0  ;;  %s3912_s24 = smov (!%p217_p3, %s2034_s24), 63  ;;  %2167 = vmatpush3.bf16.msra.mxu1 %v2225_v18  ;;  %vm1808_vm14 = vcmask 31744  }
  0x11   : > { %v417_v5 = vand.u32 %v2212_v1, %v415_v4  ;;  %s2035_s25 = sshll.u32 %s3912_s24, 2  ;;  %2168 = vmatprep.subr.bf16.mxu1 %v2226_v19  ;;  %s2037_s14 = sshll.u32 %s3912_s24, 3 }
  0x12   : > { %s2419_s28 = scalar_lea.vmem %s3848_s0, %s2035_s25  ;;  %s3637_s17 = scalar_lea.vmem %s3853_s5, %s2037_s14 }
  0x13   : > { %2132 = vmatprep.subr.bf16.mxu0 %v417_v5  ;;  %v2213_v6 = vld [vmem:[%s2419_s28] sm:$0xff]   ;;  %v2214_v7 = vld [vmem:[%s2419_s28 + $0x8] sm:$0xff]   ;;  %v2215_v8 = vld [vmem:[%s2419_s28 + $0x10] sm:$0xff]  }
  0x14   : > { %2133 = vmatpush3.bf16.msra.mxu0 %v417_v5  ;;  %2134 = vmatprep.mubr.msk.bf16.mxu0 %vm363_vm2, %v2213_v6  ;;  %v2216_v9 = vld [vmem:[%s2419_s28 + $0x18] sm:$0xff]   ;;  %v2217_v10 = vld [vmem:[%s2419_s28 + $0x20] sm:$0xff]   ;;  %v2218_v11 = vld [vmem:[%s2419_s28 + $0x28] sm:$0xff]  }
  0x15   : > { %v2219_v12 = vld [vmem:[%s2419_s28 + $0x30] sm:$0xff]   ;;  %v2220_v13 = vld [vmem:[%s2419_s28 + $0x38] sm:$0xff]   ;;  %v2221_v14 = vld [vmem:[%s2419_s28 + $0x40] sm:$0xff]   ;;  %2169 = vmatpush3.bf16.msra.mxu1 %v2226_v19 }
  0x16   : > { %v2222_v15 = vld [vmem:[%s2419_s28 + $0x48] sm:$0xff]   ;;  %v2223_v16 = vld [vmem:[%s2419_s28 + $0x50] sm:$0xff]   ;;  %v2224_v17 = vld [vmem:[%s2419_s28 + $0x58] sm:$0xff]  }
  0x17   : > { %2135 = vmatmul.mubr.msk.bf16.vlgmr.msra.gmra.mrb[0].mxu0 %vm363_vm2, %v2214_v7  ;;  %v2227_v20 = vld [vmem:[%s2419_s28 + $0x60] sm:$0xff]   ;;  %v2228_v21 = vld [vmem:[%s2419_s28 + $0x68] sm:$0xff]   ;;  %v2229_v22 = vld [vmem:[%s2419_s28 + $0x70] sm:$0xff]  }
  0x18   : > { %2138 = vmatprep.mubr.msk.bf16.mxu0 %vm363_vm2, %v2215_v8  ;;  %v2230_v23 = vld [vmem:[%s2419_s28 + $0x78] sm:$0xff]  }
  0x1f   : > { %2139 = vmatmul.mubr.msk.bf16.gmra.mrb[4].mxu0 %vm363_vm2, %v2216_v9 }
  0x20   : > { %2142 = vmatprep.mubr.msk.bf16.mxu0 %vm363_vm2, %v2217_v10 }
  0x27   : > { %2143 = vmatmul.mubr.msk.bf16.gmra.mrb[8].mxu0 %vm363_vm2, %v2218_v11 }
  0x28   : > { %2146 = vmatprep.mubr.msk.bf16.mxu0 %vm363_vm2, %v2219_v12 }
  0x2f   : > { %2147 = vmatmul.mubr.msk.bf16.gmra.mrb[12].mxu0 %vm363_vm2, %v2220_v13 }
  0x30   : > { %2150 = vmatprep.mubr.msk.bf16.mxu0 %vm363_vm2, %v2221_v14 }
  0x37   : > { %2151 = vmatmul.mubr.msk.bf16.gmra.mrb[16].mxu0 %vm363_vm2, %v2222_v15 }
  0x38   : > { %2154 = vmatprep.mubr.msk.bf16.mxu0 %vm363_vm2, %v2223_v16 }
  0x3f   : > { %2155 = vmatmul.mubr.msk.bf16.gmra.mrb[20].mxu0 %vm363_vm2, %v2224_v17 }
  0x40   : > { %2158 = vmatprep.mubr.msk.bf16.mxu0 %vm363_vm2, %v2227_v20 }
  0x47   : > { %2159 = vmatmul.mubr.msk.bf16.gmra.mrb[24].mxu0 %vm363_vm2, %v2228_v21 }
  0x48   : > { %2162 = vmatprep.mubr.msk.bf16.mxu0 %vm363_vm2, %v2229_v22 }
  0x4f   : > { %2163 = vmatmul.mubr.msk.bf16.gmra.mrb[28].mxu0 %vm363_vm2, %v2230_v23 }
  0xea   : > { %v2136_v25 = vpop.f32.mrb[0].mxu0 }
  0xeb   : > { %v462_v26 = vadd.f32 %v2136_v25, %v2462_v24  ;;  %v453_v27 = vpop.f32.mrb[1].mxu0 }
  0xec   : > { %v454_v28 = vadd.f32 %v2462_v24, %v453_v27  ;;  %v2137_v29 = vpop.f32.mrb[2].mxu0 }
  0xed   : > { %v465_v30 = vadd.f32 %v2137_v29, %v2462_v24  ;;  %v456_v31 = vpop.f32.mrb[3].mxu0  ;;  %v582_v33 = vmax.f32 %v462_v26, 0.0 }
  0xee   : > { %v457_v32 = vadd.f32 %v2462_v24, %v456_v31  ;;  %v580_v35 = vmax.f32 %v454_v28, 0.0 }
  0xef   : > { %v583_v34 = vmax.f32 %v465_v30, 0.0 }
  0xf0   : > { %v581_v36 = vmax.f32 %v457_v32, 0.0 }
  0xf1   : > { %v613_v37 = vpack.c.bf16 %v583_v34, %v582_v33 }
  0xf2   : > { %v612_v38 = vpack.c.bf16 %v581_v36, %v580_v35  ;;  %v2140_v39 = vpop.f32.mrb[4].mxu0 }
  0xf3   : > { %v478_v40 = vadd.f32 %v2140_v39, %v2462_v24  ;;  %v469_v41 = vpop.f32.mrb[5].mxu0 }
  0xf4   : > { %2170 = vmatprep.mubr.msk.bf16.mxu1 %vm651_vm3, %v612_v38  ;;  %v470_v42 = vadd.f32 %v2462_v24, %v469_v41  ;;  %v2141_v43 = vpop.f32.mrb[6].mxu0 }
  0xf5   : > { %2171 = vmatmul.mubr.msk.bf16.vlgmr.msra.gmra.mrb[0].mxu1 %vm651_vm3, %v613_v37  ;;  %v586_v44 = vmax.f32 %v478_v40, 0.0  ;;  %v481_v45 = vadd.f32 %v2141_v43, %v2462_v24  ;;  %v472_v46 = vpop.f32.mrb[7].mxu0 }
  0xf6   : > { %v584_v47 = vmax.f32 %v470_v42, 0.0  ;;  %v473_v48 = vadd.f32 %v2462_v24, %v472_v46 }
  0xf7   : > { %v587_v49 = vmax.f32 %v481_v45, 0.0 }
  0xf8   : > { %v585_v50 = vmax.f32 %v473_v48, 0.0 }
  0xf9   : > { %v615_v51 = vpack.c.bf16 %v587_v49, %v586_v44 }
  0xfa   : > { %v614_v52 = vpack.c.bf16 %v585_v50, %v584_v47  ;;  %v2144_v53 = vpop.f32.mrb[8].mxu0 }
  0xfb   : > { %v494_v54 = vadd.f32 %v2144_v53, %v2462_v24  ;;  %v485_v55 = vpop.f32.mrb[9].mxu0 }
  0xfc   : > { %2174 = vmatprep.mubr.msk.bf16.mxu1 %vm651_vm3, %v614_v52  ;;  %v486_v56 = vadd.f32 %v2462_v24, %v485_v55  ;;  %v2145_v57 = vpop.f32.mrb[10].mxu0 }
  0xfd   : > { %2175 = vmatmul.mubr.msk.bf16.gmra.mrb[4].mxu1 %vm651_vm3, %v615_v51  ;;  %v590_v58 = vmax.f32 %v494_v54, 0.0  ;;  %v497_v59 = vadd.f32 %v2145_v57, %v2462_v24  ;;  %v488_v60 = vpop.f32.mrb[11].mxu0 }
  0xfe   : > { %v588_v61 = vmax.f32 %v486_v56, 0.0  ;;  %v489_v62 = vadd.f32 %v2462_v24, %v488_v60 }
  0xff   : > { %v591_v63 = vmax.f32 %v497_v59, 0.0 }
 0x100   : > { %v589_v0 = vmax.f32 %v489_v62, 0.0 }
 0x101   : > { %v617_v1 = vpack.c.bf16 %v591_v63, %v590_v58 }
 0x102   : > { %v616_v2 = vpack.c.bf16 %v589_v0, %v588_v61  ;;  %v2148_v3 = vpop.f32.mrb[12].mxu0 }
 0x103   : > { %v510_v4 = vadd.f32 %v2148_v3, %v2462_v24  ;;  %v501_v5 = vpop.f32.mrb[13].mxu0 }
 0x104   : > { %2178 = vmatprep.mubr.msk.bf16.mxu1 %vm651_vm3, %v616_v2  ;;  %v502_v6 = vadd.f32 %v2462_v24, %v501_v5  ;;  %v2149_v7 = vpop.f32.mrb[14].mxu0 }
 0x105   : > { %2179 = vmatmul.mubr.msk.bf16.gmra.mrb[8].mxu1 %vm651_vm3, %v617_v1  ;;  %v594_v8 = vmax.f32 %v510_v4, 0.0  ;;  %v513_v9 = vadd.f32 %v2149_v7, %v2462_v24  ;;  %v504_v10 = vpop.f32.mrb[15].mxu0 }
 0x106   : > { %v592_v11 = vmax.f32 %v502_v6, 0.0  ;;  %v505_v12 = vadd.f32 %v2462_v24, %v504_v10  ;;  %v861_v10 = vlaneseq }
 0x107   : > { %v595_v13 = vmax.f32 %v513_v9, 0.0 }
 0x108   : > { %v593_v14 = vmax.f32 %v505_v12, 0.0  ;;  %v2519_v12 = vld [vmem:[%s3852_s4] ss:$0 sm:$0xff] }
 0x109   : > { %v619_v15 = vpack.c.bf16 %v595_v13, %v594_v8 }
 0x10a   : > { %v618_v16 = vpack.c.bf16 %v593_v14, %v592_v11  ;;  %v2152_v17 = vpop.f32.mrb[16].mxu0  ;;  %v2512_v11 = vand.u32 127, %v861_v10 }
 0x10b   : > { %v526_v18 = vadd.f32 %v2152_v17, %v2462_v24  ;;  %v517_v19 = vpop.f32.mrb[17].mxu0 }
 0x10c   : > { %2182 = vmatprep.mubr.msk.bf16.mxu1 %vm651_vm3, %v618_v16  ;;  %v518_v20 = vadd.f32 %v2462_v24, %v517_v19  ;;  %v2153_v21 = vpop.f32.mrb[18].mxu0  ;;  %vm865_vm4 = vcmp.ge.s32.totalorder %v2512_v11, 80  ;;  %vm866_vm5 = vcmp.lt.s32.totalorder %v2512_v11, 89  ;;  %vm864_vm7 = vcmp.lt.s32.totalorder %v2512_v11, 80 }
 0x10d   : > { %2183 = vmatmul.mubr.msk.bf16.gmra.mrb[12].mxu1 %vm651_vm3, %v619_v15  ;;  %v598_v22 = vmax.f32 %v526_v18, 0.0  ;;  %v529_v23 = vadd.f32 %v2153_v21, %v2462_v24  ;;  %v520_v25 = vpop.f32.mrb[19].mxu0  ;;  %vm2521_vm6 = vmand %vm865_vm4, %vm866_vm5  ;;  %vm868_vm8 = vcmp.ge.s32.totalorder %v2512_v11, 89  ;;  %vm869_vm9 = vcmp.lt.s32.totalorder %v2512_v11, 98 }
 0x10e   : > { %v596_v26 = vmax.f32 %v518_v20, 0.0  ;;  %v521_v27 = vadd.f32 %v2462_v24, %v520_v25  ;;  %vm2546_vm10 = vmand %vm868_vm8, %vm869_vm9 }
 0x10f   : > { %v599_v28 = vmax.f32 %v529_v23, 0.0 }
 0x110   : > { %v597_v29 = vmax.f32 %v521_v27, 0.0 }
 0x111   : > { %v621_v30 = vpack.c.bf16 %v599_v28, %v598_v22 }
 0x112   : > { %v620_v31 = vpack.c.bf16 %v597_v29, %v596_v26  ;;  %v2156_v32 = vpop.f32.mrb[20].mxu0 }
 0x113   : > { %v542_v33 = vadd.f32 %v2156_v32, %v2462_v24  ;;  %v533_v34 = vpop.f32.mrb[21].mxu0 }
 0x114   : > { %2186 = vmatprep.mubr.msk.bf16.mxu1 %vm651_vm3, %v620_v31  ;;  %v534_v35 = vadd.f32 %v2462_v24, %v533_v34  ;;  %v2157_v36 = vpop.f32.mrb[22].mxu0 }
 0x115   : > { %2187 = vmatmul.mubr.msk.bf16.gmra.mrb[16].mxu1 %vm651_vm3, %v621_v30  ;;  %v602_v37 = vmax.f32 %v542_v33, 0.0  ;;  %v545_v38 = vadd.f32 %v2157_v36, %v2462_v24  ;;  %v536_v39 = vpop.f32.mrb[23].mxu0 }
 0x116   : > { %v600_v40 = vmax.f32 %v534_v35, 0.0  ;;  %v537_v41 = vadd.f32 %v2462_v24, %v536_v39 }
 0x117   : > { %v603_v42 = vmax.f32 %v545_v38, 0.0 }
 0x118   : > { %v601_v43 = vmax.f32 %v537_v41, 0.0 }
 0x119   : > { %v623_v44 = vpack.c.bf16 %v603_v42, %v602_v37 }
 0x11a   : > { %v622_v45 = vpack.c.bf16 %v601_v43, %v600_v40  ;;  %v2160_v46 = vpop.f32.mrb[24].mxu0 }
 0x11b   : > { %v558_v47 = vadd.f32 %v2160_v46, %v2462_v24  ;;  %v549_v48 = vpop.f32.mrb[25].mxu0 }
 0x11c   : > { %2190 = vmatprep.mubr.msk.bf16.mxu1 %vm651_vm3, %v622_v45  ;;  %v550_v49 = vadd.f32 %v2462_v24, %v549_v48  ;;  %v2161_v50 = vpop.f32.mrb[26].mxu0 }
 0x11d   : > { %2191 = vmatmul.mubr.msk.bf16.gmra.mrb[20].mxu1 %vm651_vm3, %v623_v44  ;;  %v606_v51 = vmax.f32 %v558_v47, 0.0  ;;  %v561_v52 = vadd.f32 %v2161_v50, %v2462_v24  ;;  %v552_v53 = vpop.f32.mrb[27].mxu0 }
 0x11e   : > { %v604_v54 = vmax.f32 %v550_v49, 0.0  ;;  %v553_v55 = vadd.f32 %v2462_v24, %v552_v53 }
 0x11f   : > { %v607_v56 = vmax.f32 %v561_v52, 0.0 }
 0x120   : > { %v605_v57 = vmax.f32 %v553_v55, 0.0 }
 0x121   : > { %v625_v58 = vpack.c.bf16 %v607_v56, %v606_v51 }
 0x122   : > { %v624_v59 = vpack.c.bf16 %v605_v57, %v604_v54  ;;  %v2164_v60 = vpop.f32.mrb[28].mxu0 }
 0x123   : > { %v574_v61 = vadd.f32 %v2164_v60, %v2462_v24  ;;  %v565_v62 = vpop.f32.mrb[29].mxu0 }
 0x124   : > { %2194 = vmatprep.mubr.msk.bf16.mxu1 %vm651_vm3, %v624_v59  ;;  %v566_v63 = vadd.f32 %v2462_v24, %v565_v62  ;;  %v2165_v0 = vpop.f32.mrb[30].mxu0 }
 0x125   : > { %2195 = vmatmul.mubr.msk.bf16.gmra.mrb[24].mxu1 %vm651_vm3, %v625_v58  ;;  %v610_v1 = vmax.f32 %v574_v61, 0.0  ;;  %v577_v2 = vadd.f32 %v2165_v0, %v2462_v24  ;;  %v568_v3 = vpop.f32.mrb[31].mxu0 }
 0x126   : > { %v608_v4 = vmax.f32 %v566_v63, 0.0  ;;  %v569_v5 = vadd.f32 %v2462_v24, %v568_v3 }
 0x127   : > { %v611_v6 = vmax.f32 %v577_v2, 0.0 }
 0x128   : > { %v609_v7 = vmax.f32 %v569_v5, 0.0 }
 0x129   : > { %v627_v8 = vpack.c.bf16 %v611_v6, %v610_v1 }
 0x12a   : > { %v626_v9 = vpack.c.bf16 %v609_v7, %v608_v4 }
 0x12c   : > { %2198 = vmatprep.mubr.msk.bf16.mxu1 %vm651_vm3, %v626_v9 }
 0x12d   : > { %2199 = vmatmul.mubr.msk.bf16.gmra.mrb[28].mxu1 %vm651_vm3, %v627_v8 }
 0x1c8   : > { %v2172_v24 = vpop.f32.mrb[0].mxu1 }
 0x1c9   : > { %v2527_v14 = vadd.f32 %v2172_v24, %v2519_v12  ;;  %v734_v15 = vpop.f32.mrb[1].mxu1 }
 0x1ca   : > { %v2173_v16 = vpop.f32.mrb[2].mxu1  ;;  %v2561_v31 = vadd.f32 %v2519_v12, %v734_v15 }
 0x1cb   : > { %v2530_v17 = vadd.f32 %v2173_v16, %v2519_v12  ;;  %v737_v18 = vpop.f32.mrb[3].mxu1  ;;  %v1325_v19 = vsel %vm2521_vm6, %v2527_v14, inf  ;;  %v875_v20 = vsel %vm864_vm7, %v2527_v14, -inf  ;;  %v1421_v21 = vsel %vm2521_vm6, %v2527_v14, -inf }
 0x1cc   : > { %1359 = vmin.xlane.f32.xlu0 %v1325_v19  ;;  %909 = vmax.xlane.f32.xlu1 %v875_v20  ;;  %v1519_v28 = vsel %vm2546_vm10, %v2527_v14, inf  ;;  %v1615_v32 = vsel %vm2546_vm10, %v2527_v14, -inf  ;;  %v873_v38 = vsel %vm864_vm7, %v2561_v31, -inf  ;;  %v2584_v40 = vadd.f32 %v2519_v12, %v737_v18 }
 0x1cd   : > { %v876_v22 = vsel %vm864_vm7, %v2530_v17, -inf  ;;  %v1326_v29 = vsel %vm2521_vm6, %v2530_v17, inf  ;;  %v1422_v33 = vsel %vm2521_vm6, %v2530_v17, -inf  ;;  %v1520_v37 = vsel %vm2546_vm10, %v2530_v17, inf }
 0x1ce   : > { %v1616_v41 = vsel %vm2546_vm10, %v2530_v17, -inf  ;;  %v1323_v42 = vsel %vm2521_vm6, %v2561_v31, inf  ;;  %v1324_v46 = vsel %vm2521_vm6, %v2584_v40, inf  ;;  %v1419_v47 = vsel %vm2521_vm6, %v2561_v31, -inf }
 0x1cf   : > { %v1420_v49 = vsel %vm2521_vm6, %v2584_v40, -inf  ;;  %v1517_v50 = vsel %vm2546_vm10, %v2561_v31, inf  ;;  %v1518_v54 = vsel %vm2546_vm10, %v2584_v40, inf  ;;  %v1613_v55 = vsel %vm2546_vm10, %v2561_v31, -inf }
 0x1d0   : > { %1455 = vmax.xlane.f32.xlu0 %v1421_v21  ;;  %911 = vmax.xlane.f32.xlu1 %v876_v22  ;;  %v2176_v25 = vpop.f32.mrb[4].mxu1  ;;  %v1614_v59 = vsel %vm2546_vm10, %v2584_v40, -inf  ;;  %v874_v60 = vsel %vm864_vm7, %v2584_v40, -inf }
 0x1d1   : > { %v2550_v26 = vpop.f32.mrb[5].mxu1  ;;  %v2627_v57 = vadd.f32 %v2176_v25, %v2519_v12 }
 0x1d2   : > { %v2177_v27 = vpop.f32.mrb[6].mxu1  ;;  %v2664_v5 = vadd.f32 %v2519_v12, %v2550_v26 }
 0x1d3   : > { %v2558_v30 = vpop.f32.mrb[7].mxu1  ;;  %v2630_v58 = vadd.f32 %v2177_v27, %v2519_v12  ;;  %v879_v62 = vsel %vm864_vm7, %v2627_v57, -inf  ;;  %v1329_v0 = vsel %vm2521_vm6, %v2627_v57, inf  ;;  %v1425_v2 = vsel %vm2521_vm6, %v2627_v57, -inf }
 0x1d4   : > { %1553 = vmin.xlane.f32.xlu0 %v1519_v28  ;;  %1361 = vmin.xlane.f32.xlu1 %v1326_v29  ;;  %v1523_v4 = vsel %vm2546_vm10, %v2627_v57, inf  ;;  %v2668_v6 = vadd.f32 %v2519_v12, %v2558_v30  ;;  %v1619_v8 = vsel %vm2546_vm10, %v2627_v57, -inf  ;;  %v877_v10 = vsel %vm864_vm7, %v2664_v5, -inf }
 0x1d5   : > { %v880_v61 = vsel %vm864_vm7, %v2630_v58, -inf  ;;  %v1330_v63 = vsel %vm2521_vm6, %v2630_v58, inf  ;;  %v1426_v1 = vsel %vm2521_vm6, %v2630_v58, -inf  ;;  %v1524_v3 = vsel %vm2546_vm10, %v2630_v58, inf }
 0x1d6   : > { %v1620_v7 = vsel %vm2546_vm10, %v2630_v58, -inf  ;;  %v878_v9 = vsel %vm864_vm7, %v2668_v6, -inf  ;;  %v1328_v15 = vsel %vm2521_vm6, %v2668_v6, inf  ;;  %v1327_v16 = vsel %vm2521_vm6, %v2664_v5, inf }
 0x1d7   : > { %v1424_v21 = vsel %vm2521_vm6, %v2668_v6, -inf  ;;  %v1423_v22 = vsel %vm2521_vm6, %v2664_v5, -inf  ;;  %v1522_v25 = vsel %vm2546_vm10, %v2668_v6, inf  ;;  %v1521_v26 = vsel %vm2546_vm10, %v2664_v5, inf }
 0x1d8   : > { %1649 = vmax.xlane.f32.xlu0 %v1615_v32  ;;  %1457 = vmax.xlane.f32.xlu1 %v1422_v33  ;;  %v2569_v34 = vpop.f32.mrb[8].mxu1  ;;  %v1618_v29 = vsel %vm2546_vm10, %v2668_v6, -inf  ;;  %v1617_v30 = vsel %vm2546_vm10, %v2664_v5, -inf }
 0x1d9   : > { %v2571_v35 = vpop.f32.mrb[9].mxu1  ;;  %v2710_v27 = vadd.f32 %v2569_v34, %v2519_v12 }
 0x1da   : > { %v2573_v36 = vpop.f32.mrb[10].mxu1 }
 0x1db   : > { %v2581_v39 = vpop.f32.mrb[11].mxu1  ;;  %v2714_v28 = vadd.f32 %v2573_v36, %v2519_v12  ;;  %v883_v33 = vsel %vm864_vm7, %v2710_v27, -inf  ;;  %v1333_v36 = vsel %vm2521_vm6, %v2710_v27, inf }
 0x1dc   : > { %1555 = vmin.xlane.f32.xlu1 %v1520_v37  ;;  %905 = vmax.xlane.f32.xlu0 %v873_v38  ;;  %v1429_v38 = vsel %vm2521_vm6, %v2710_v27, -inf }
 0x1dd   : > { %v884_v32 = vsel %vm864_vm7, %v2714_v28, -inf  ;;  %v1334_v34 = vsel %vm2521_vm6, %v2714_v28, inf  ;;  %v1430_v37 = vsel %vm2521_vm6, %v2714_v28, -inf }
 0x1e0   : > { %1651 = vmax.xlane.f32.xlu1 %v1616_v41  ;;  %1355 = vmin.xlane.f32.xlu0 %v1323_v42  ;;  %v2592_v43 = vpop.f32.mrb[12].mxu1  ;;  %v1528_v41 = vsel %vm2546_vm10, %v2714_v28, inf  ;;  %v1527_v42 = vsel %vm2546_vm10, %v2710_v27, inf }
 0x1e1   : > { %v2594_v44 = vpop.f32.mrb[13].mxu1 }
 0x1e2   : > { %v2596_v45 = vpop.f32.mrb[14].mxu1 }
 0x1e3   : > { %v2604_v48 = vpop.f32.mrb[15].mxu1 }
 0x1e4   : > { %1357 = vmin.xlane.f32.xlu1 %v1324_v46  ;;  %1451 = vmax.xlane.f32.xlu0 %v1419_v47  ;;  %v2748_v46 = vadd.f32 %v2519_v12, %v2571_v35  ;;  %v2752_v47 = vadd.f32 %v2519_v12, %v2581_v39 }
 0x1e6   : > { %v881_v35 = vsel %vm864_vm7, %v2748_v46, -inf }
 0x1e8   : > { %1453 = vmax.xlane.f32.xlu1 %v1420_v49  ;;  %1549 = vmin.xlane.f32.xlu0 %v1517_v50  ;;  %v2612_v51 = vpop.f32.mrb[16].mxu1  ;;  %v1624_v49 = vsel %vm2546_vm10, %v2714_v28, -inf  ;;  %v1623_v50 = vsel %vm2546_vm10, %v2710_v27, -inf }
 0x1e9   : > { %v2614_v52 = vpop.f32.mrb[17].mxu1 }
 0x1ea   : > { %v2616_v53 = vpop.f32.mrb[18].mxu1 }
 0x1eb   : > { %v2624_v56 = vpop.f32.mrb[19].mxu1 }
 0x1ec   : > { %1551 = vmin.xlane.f32.xlu1 %v1518_v54  ;;  %1645 = vmax.xlane.f32.xlu0 %v1613_v55  ;;  %v882_v54 = vsel %vm864_vm7, %v2752_v47, -inf  ;;  %v1332_v55 = vsel %vm2521_vm6, %v2752_v47, inf }
 0x1f0   : > { %1647 = vmax.xlane.f32.xlu1 %v1614_v59  ;;  %907 = vmax.xlane.f32.xlu0 %v874_v60  ;;  %v2682_v24 = vpop.f32.mrb[20].mxu1  ;;  %v1331_v59 = vsel %vm2521_vm6, %v2748_v46, inf }
 0x1f1   : > { %v2690_v18 = vpop.f32.mrb[21].mxu1 }
 0x1f2   : > { %v2692_v19 = vpop.f32.mrb[22].mxu1 }
 0x1f3   : > { %v2694_v20 = vpop.f32.mrb[23].mxu1 }
 0x1f4   : > { %919 = vmax.xlane.f32.xlu1 %v880_v61  ;;  %917 = vmax.xlane.f32.xlu0 %v879_v62 }
 0x1f8   : > { %1369 = vmin.xlane.f32.xlu1 %v1330_v63  ;;  %1367 = vmin.xlane.f32.xlu0 %v1329_v0  ;;  %v2766_v39 = vpop.f32.mrb[24].mxu1  ;;  %v1428_v63 = vsel %vm2521_vm6, %v2752_v47, -inf  ;;  %v1427_v0 = vsel %vm2521_vm6, %v2748_v46, -inf }
 0x1f9   : > { %v2774_v60 = vpop.f32.mrb[25].mxu1 }
 0x1fa   : > { %v2776_v61 = vpop.f32.mrb[26].mxu1 }
 0x1fb   : > { %v2778_v62 = vpop.f32.mrb[27].mxu1 }
 0x1fc   : > { %1465 = vmax.xlane.f32.xlu1 %v1426_v1  ;;  %1463 = vmax.xlane.f32.xlu0 %v1425_v2  ;;  %v1526_v1 = vsel %vm2546_vm10, %v2752_v47, inf  ;;  %v1525_v2 = vsel %vm2546_vm10, %v2748_v46, inf }
 0x200   : > { %1563 = vmin.xlane.f32.xlu1 %v1524_v3  ;;  %1561 = vmin.xlane.f32.xlu0 %v1523_v4  ;;  %v2794_v3 = vadd.f32 %v2592_v43, %v2519_v12  ;;  %v2798_v4 = vadd.f32 %v2596_v45, %v2519_v12 }
 0x202   : > { %v887_v43 = vsel %vm864_vm7, %v2794_v3, -inf  ;;  %v1338_v45 = vsel %vm2521_vm6, %v2798_v4, inf }
 0x204   : > { %1659 = vmax.xlane.f32.xlu1 %v1620_v7  ;;  %1657 = vmax.xlane.f32.xlu0 %v1619_v8  ;;  %v1622_v7 = vsel %vm2546_vm10, %v2752_v47, -inf  ;;  %v1621_v8 = vsel %vm2546_vm10, %v2748_v46, -inf }
 0x208   : > { %915 = vmax.xlane.f32.xlu1 %v878_v9  ;;  %913 = vmax.xlane.f32.xlu0 %v877_v10  ;;  %v888_v9 = vsel %vm864_vm7, %v2798_v4, -inf  ;;  %v1337_v10 = vsel %vm2521_vm6, %v2794_v3, inf }
 0x20c   : > { %1365 = vmin.xlane.f32.xlu1 %v1328_v15  ;;  %1363 = vmin.xlane.f32.xlu0 %v1327_v16  ;;  %v1434_v15 = vsel %vm2521_vm6, %v2798_v4, -inf  ;;  %v1433_v16 = vsel %vm2521_vm6, %v2794_v3, -inf }
 0x210   : > { %1461 = vmax.xlane.f32.xlu1 %v1424_v21  ;;  %1459 = vmax.xlane.f32.xlu0 %v1423_v22  ;;  %v1532_v21 = vsel %vm2546_vm10, %v2798_v4, inf  ;;  %v1531_v22 = vsel %vm2546_vm10, %v2794_v3, inf }
 0x214   : > { %1559 = vmin.xlane.f32.xlu1 %v1522_v25  ;;  %1557 = vmin.xlane.f32.xlu0 %v1521_v26  ;;  %v2832_v25 = vadd.f32 %v2519_v12, %v2594_v44  ;;  %v2836_v26 = vadd.f32 %v2519_v12, %v2604_v48 }
 0x216   : > { %v885_v44 = vsel %vm864_vm7, %v2832_v25, -inf }
 0x218   : > { %1655 = vmax.xlane.f32.xlu1 %v1618_v29  ;;  %1653 = vmax.xlane.f32.xlu0 %v1617_v30  ;;  %v1628_v29 = vsel %vm2546_vm10, %v2798_v4, -inf  ;;  %v1627_v30 = vsel %vm2546_vm10, %v2794_v3, -inf }
 0x21c   : > { %927 = vmax.xlane.f32.xlu1 %v884_v32  ;;  %925 = vmax.xlane.f32.xlu0 %v883_v33  ;;  %v886_v32 = vsel %vm864_vm7, %v2836_v26, -inf }
 0x220   : > { %1377 = vmin.xlane.f32.xlu1 %v1334_v34  ;;  %1375 = vmin.xlane.f32.xlu0 %v1333_v36  ;;  %v2853_v36 = vpop.f32.mrb[28].mxu1 }
 0x224   : > { %1473 = vmax.xlane.f32.xlu1 %v1430_v37  ;;  %1471 = vmax.xlane.f32.xlu0 %v1429_v38  ;;  %v1336_v37 = vsel %vm2521_vm6, %v2836_v26, inf  ;;  %v1335_v38 = vsel %vm2521_vm6, %v2832_v25, inf }
 0x228   : > { %1571 = vmin.xlane.f32.xlu1 %v1528_v41  ;;  %1569 = vmin.xlane.f32.xlu0 %v1527_v42  ;;  %v2861_v41 = vpop.f32.mrb[29].mxu1 }
 0x22c   : > { %1667 = vmax.xlane.f32.xlu1 %v1624_v49  ;;  %1665 = vmax.xlane.f32.xlu0 %v1623_v50  ;;  %v2863_v49 = vpop.f32.mrb[30].mxu1 }
 0x230   : > { %923 = vmax.xlane.f32.xlu1 %v882_v54  ;;  %921 = vmax.xlane.f32.xlu0 %v881_v35 }
 0x234   : > { %1373 = vmin.xlane.f32.xlu1 %v1332_v55  ;;  %1371 = vmin.xlane.f32.xlu0 %v1331_v59  ;;  %v2868_v55 = vpop.f32.mrb[31].mxu1  ;;  %v1432_v59 = vsel %vm2521_vm6, %v2836_v26, -inf }
 0x238   : > { %1469 = vmax.xlane.f32.xlu1 %v1428_v63  ;;  %1467 = vmax.xlane.f32.xlu0 %v1427_v0  ;;  %v1431_v63 = vsel %vm2521_vm6, %v2832_v25, -inf }
 0x23c   : > { %1567 = vmin.xlane.f32.xlu1 %v1526_v1  ;;  %1565 = vmin.xlane.f32.xlu0 %v1525_v2 }
 0x240   : > { %1663 = vmax.xlane.f32.xlu1 %v1622_v7  ;;  %1661 = vmax.xlane.f32.xlu0 %v1621_v8  ;;  %v1530_v8 = vsel %vm2546_vm10, %v2836_v26, inf }
 0x244   : > { %935 = vmax.xlane.f32.xlu1 %v888_v9  ;;  %933 = vmax.xlane.f32.xlu0 %v887_v43  ;;  %v1529_v9 = vsel %vm2546_vm10, %v2832_v25, inf }
 0x248   : > { %1385 = vmin.xlane.f32.xlu1 %v1338_v45  ;;  %1383 = vmin.xlane.f32.xlu0 %v1337_v10 }
 0x24c   : > { %1481 = vmax.xlane.f32.xlu1 %v1434_v15  ;;  %1479 = vmax.xlane.f32.xlu0 %v1433_v16  ;;  %v2887_v16 = vadd.f32 %v2612_v51, %v2519_v12 }
 0x250   : > { %1579 = vmin.xlane.f32.xlu1 %v1532_v21  ;;  %1577 = vmin.xlane.f32.xlu0 %v1531_v22  ;;  %v2891_v21 = vadd.f32 %v2616_v53, %v2519_v12  ;;  %v1626_v22 = vsel %vm2546_vm10, %v2836_v26, -inf }
 0x254   : > { %1675 = vmax.xlane.f32.xlu1 %v1628_v29  ;;  %1673 = vmax.xlane.f32.xlu0 %v1627_v30  ;;  %v1625_v29 = vsel %vm2546_vm10, %v2832_v25, -inf }
 0x258   : > { %931 = vmax.xlane.f32.xlu1 %v886_v32  ;;  %929 = vmax.xlane.f32.xlu0 %v885_v44 }
 0x259   : > { %v1360_v48 = vpop.xlane.xlu0 %1359  ;;  %v2850_v33 = vpop.xlane.xlu1 %909 }
 0x25a   : > { %v1131_v34 = vsub.f32 0.0, %v2850_v33  ;;  %vm971_vm15 = vcmp.ge.f32.partialorder %v2527_v14, %v2850_v33  ;;  %v3338_v33 = vcvt.s32.f32 %v2512_v11 }
 0x25b   : > { %vm1003_vm1 = vmand %vm864_vm7, %vm971_vm15 }
 0x25c   : > { %v1165_v42 = vmul.f32 1.442695, %v1131_v34  ;;  %1381 = vmin.xlane.f32.xlu1 %v1336_v37  ;;  %1379 = vmin.xlane.f32.xlu0 %v1335_v38  ;;  %v892_v34 = vsel %vm864_vm7, %v2891_v21, -inf  ;;  %v891_v37 = vsel %vm864_vm7, %v2887_v16, -inf }
 0x25d   : > { %v1456_v50 = vpop.xlane.xlu0 %1455  ;;  %v2865_v54 = vpop.xlane.xlu1 %911 }
 0x25e   : > { %2231 = vpow2.f32 %v1165_v42  ;;  %v1132_v35 = vsub.f32 0.0, %v2865_v54  ;;  %vm972_vm0 = vcmp.ge.f32.partialorder %v2530_v17, %v2865_v54 }
 0x25f   : > { %vm1004_vm3 = vmand %vm864_vm7, %vm972_vm0 }
 0x260   : > { %v1167_v0 = vmul.f32 1.442695, %v1132_v35  ;;  %1477 = vmax.xlane.f32.xlu1 %v1432_v59  ;;  %1475 = vmax.xlane.f32.xlu0 %v1431_v63 }
 0x261   : > { %v1554_v1 = vpop.xlane.xlu0 %1553  ;;  %v1362_v2 = vpop.xlane.xlu1 %1361 }
 0x262   : > { %2233 = vpow2.f32 %v1167_v0  ;;  %v1712_v7 = vsel %vm1709_vm11, %v1360_v48, %v1554_v1  ;;  %v1342_v1 = vsel %vm2521_vm6, %v2891_v21, inf }
 0x263   : > { %v1745_v43 = vsel %vm1742_vm12, %v1712_v7, %v1456_v50 }
 0x264   : > { %1575 = vmin.xlane.f32.xlu1 %v1530_v8  ;;  %1573 = vmin.xlane.f32.xlu0 %v1529_v9  ;;  %v1438_v9 = vsel %vm2521_vm6, %v2891_v21, -inf }
 0x265   : > { %v1650_v45 = vpop.xlane.xlu0 %1649  ;;  %v1458_v10 = vpop.xlane.xlu1 %1457 }
 0x266   : > { %v1778_v15 = vsel %vm1775_vm13, %v1745_v43, %v1650_v45  ;;  %v1437_v43 = vsel %vm2521_vm6, %v2887_v16, -inf }
 0x268   : > { %v2232_v30 = vpop.eup %2231  ;;  %1671 = vmax.xlane.f32.xlu1 %v1626_v22  ;;  %1669 = vmax.xlane.f32.xlu0 %v1625_v29 }
 0x269   : > { %v1227_v32 = vadd.f32 1.0, %v2232_v30  ;;  %v1556_v44 = vpop.xlane.xlu1 %1555  ;;  %v2899_v48 = vpop.xlane.xlu0 %905 }
 0x26a   : > { %v1713_v51 = vsel %vm1709_vm11, %v1362_v2, %v1556_v44  ;;  %v1129_v53 = vsub.f32 0.0, %v2899_v48  ;;  %v1341_v2 = vsel %vm2521_vm6, %v2887_v16, inf  ;;  %v1535_v44 = vsel %vm2546_vm10, %v2887_v16, inf }
 0x26b   : > { %2235 = vrcp.f32 %v1227_v32  ;;  %v1746_v38 = vsel %vm1742_vm12, %v1713_v51, %v1458_v10  ;;  %v1536_v32 = vsel %vm2546_vm10, %v2891_v21, inf  ;;  %vm969_vm2 = vcmp.ge.f32.partialorder %v2561_v31, %v2899_v48 }
 0x26c   : > { %v2234_v42 = vpop.eup %2233  ;;  %v1161_v50 = vmul.f32 1.442695, %v1129_v53  ;;  %943 = vmax.xlane.f32.xlu1 %v892_v34  ;;  %941 = vmax.xlane.f32.xlu0 %v891_v37  ;;  %v2936_v37 = vadd.f32 %v2519_v12, %v2614_v52  ;;  %v1632_v52 = vsel %vm2546_vm10, %v2891_v21, -inf  ;;  %vm3355_vm5 = vmand %vm864_vm7, %vm969_vm2 }
 0x26d   : > { %v1228_v35 = vadd.f32 1.0, %v2234_v42  ;;  %v1652_v59 = vpop.xlane.xlu1 %1651  ;;  %v1356_v63 = vpop.xlane.xlu0 %1355 }
 0x26e   : > { %2237 = vpow2.f32 %v1161_v50  ;;  %v1779_v0 = vsel %vm1775_vm13, %v1746_v38, %v1652_v59  ;;  %v2940_v50 = vadd.f32 %v2519_v12, %v2624_v56 }
 0x26f   : > { %2239 = vrcp.f32 %v1228_v35 }
 0x270   : > { %1393 = vmin.xlane.f32.xlu1 %v1342_v1  ;;  %1391 = vmin.xlane.f32.xlu0 %v1341_v2  ;;  %v1631_v1 = vsel %vm2546_vm10, %v2887_v16, -inf }
 0x271   : > { %v1358_v7 = vpop.xlane.xlu1 %1357  ;;  %v1452_v8 = vpop.xlane.xlu0 %1451 }
 0x274   : > { %1489 = vmax.xlane.f32.xlu1 %v1438_v9  ;;  %1487 = vmax.xlane.f32.xlu0 %v1437_v43  ;;  %v890_v9 = vsel %vm864_vm7, %v2940_v50, -inf  ;;  %v889_v43 = vsel %vm864_vm7, %v2936_v37, -inf }
 0x275   : > { %v2236_v45 = vpop.eup %2235  ;;  %v1454_v10 = vpop.xlane.xlu1 %1453 }
 0x276   : > { %v1550_v22 = vpop.xlane.xlu0 %1549  ;;  %v2925_v30 = vsel %vm1808_vm14, %v1778_v15, %v2236_v45 }
 0x277   : > { %v1710_v29 = vsel %vm1709_vm11, %v1356_v63, %v1550_v22  ;;  %3863 = vst [vmem:[#allocation2_spill] sm:$0xff] %v2925_v30 }
 0x278   : > { %v1743_v51 = vsel %vm1742_vm12, %v1710_v29, %v1452_v8  ;;  %v2238_v53 = vpop.eup %2237  ;;  %1587 = vmin.xlane.f32.xlu1 %v1536_v32  ;;  %1585 = vmin.xlane.f32.xlu0 %v1535_v44  ;;  %v1340_v44 = vsel %vm2521_vm6, %v2940_v50, inf }
 0x279   : > { %v2240_v34 = vpop.eup %2239  ;;  %v1225_v15 = vadd.f32 1.0, %v2238_v53  ;;  %v1552_v38 = vpop.xlane.xlu1 %1551 }
 0x27a   : > { %v1646_v42 = vpop.xlane.xlu0 %1645  ;;  %v1711_v35 = vsel %vm1709_vm11, %v1358_v7, %v1552_v38  ;;  %v2945_v63 = vsel %vm1808_vm14, %v1779_v0, %v2240_v34 }
 0x27b   : > { %v1776_v59 = vsel %vm1775_vm13, %v1743_v51, %v1646_v42  ;;  %3864 = vst [vmem:[#allocation3_spill] sm:$0xff] %v2945_v63  ;;  %2241 = vrcp.f32 %v1225_v15  ;;  %v1744_v2 = vsel %vm1742_vm12, %v1711_v35, %v1454_v10  ;;  %v1339_v51 = vsel %vm2521_vm6, %v2936_v37, inf }
 0x27c   : > { %1683 = vmax.xlane.f32.xlu1 %v1632_v52  ;;  %1681 = vmax.xlane.f32.xlu0 %v1631_v1  ;;  %v1436_v52 = vsel %vm2521_vm6, %v2940_v50, -inf  ;;  %v1435_v1 = vsel %vm2521_vm6, %v2936_v37, -inf }
 0x27d   : > { %v1648_v56 = vpop.xlane.xlu1 %1647 }
 0x27e   : > { %v2954_v7 = vpop.xlane.xlu0 %907  ;;  %v2957_v8 = vsel %vm1775_vm13, %v1744_v2, %v1648_v56 }
 0x27f   : > { %v1130_v0 = vsub.f32 0.0, %v2954_v7  ;;  %vm970_vm4 = vcmp.ge.f32.partialorder %v2584_v40, %v2954_v7 }
 0x280   : > { %939 = vmax.xlane.f32.xlu1 %v890_v9  ;;  %937 = vmax.xlane.f32.xlu0 %v889_v43  ;;  %vm1002_vm8 = vmand %vm864_vm7, %vm970_vm4 }
 0x281   : > { %v1163_v45 = vmul.f32 1.442695, %v1130_v0  ;;  %v2966_v10 = vpop.xlane.xlu1 %919  ;;  %v1534_v0 = vsel %vm2546_vm10, %v2940_v50, inf }
 0x282   : > { %v2968_v22 = vpop.xlane.xlu0 %917  ;;  %v1136_v29 = vsub.f32 0.0, %v2966_v10 }
 0x283   : > { %2243 = vpow2.f32 %v1163_v45  ;;  %v1135_v32 = vsub.f32 0.0, %v2968_v22  ;;  %vm975_vm9 = vcmp.ge.f32.partialorder %v2627_v57, %v2968_v22 }
 0x284   : > { %v1175_v53 = vmul.f32 1.442695, %v1136_v29  ;;  %1389 = vmin.xlane.f32.xlu1 %v1340_v44  ;;  %1387 = vmin.xlane.f32.xlu0 %v1339_v51  ;;  %v2998_v44 = vadd.f32 %v2682_v24, %v2519_v12 }
 0x285   : > { %v2242_v34 = vpop.eup %2241  ;;  %v1173_v15 = vmul.f32 1.442695, %v1135_v32  ;;  %v1370_v38 = vpop.xlane.xlu1 %1369  ;;  %v1630_v32 = vsel %vm2546_vm10, %v2940_v50, -inf }
 0x286   : > { %v1368_v42 = vpop.xlane.xlu0 %1367  ;;  %2245 = vpow2.f32 %v1175_v53  ;;  %v2979_v35 = vsel %vm1808_vm14, %v1776_v59, %v2242_v34  ;;  %v1533_v59 = vsel %vm2546_vm10, %v2936_v37, inf  ;;  %v1629_v34 = vsel %vm2546_vm10, %v2936_v37, -inf }
 0x287   : > { %3865 = vst [vmem:[#allocation4_spill] sm:$0xff] %v2979_v35  ;;  %2247 = vpow2.f32 %v1173_v15  ;;  %v3007_v15 = vadd.f32 %v2692_v19, %v2519_v12 }
 0x288   : > { %1485 = vmax.xlane.f32.xlu1 %v1436_v52  ;;  %1483 = vmax.xlane.f32.xlu0 %v1435_v1 }
 0x289   : > { %v1466_v2 = vpop.xlane.xlu1 %1465  ;;  %v896_v19 = vsel %vm864_vm7, %v3007_v15, -inf }
 0x28a   : > { %v1464_v56 = vpop.xlane.xlu0 %1463 }
 0x28c   : > { %1583 = vmin.xlane.f32.xlu1 %v1534_v0  ;;  %1581 = vmin.xlane.f32.xlu0 %v1533_v59 }
 0x28d   : > { %v2244_v9 = vpop.eup %2243  ;;  %v1564_v45 = vpop.xlane.xlu1 %1563 }
 0x28e   : > { %v1226_v43 = vadd.f32 1.0, %v2244_v9  ;;  %v1562_v29 = vpop.xlane.xlu0 %1561  ;;  %v1717_v51 = vsel %vm1709_vm11, %v1370_v38, %v1564_v45 }
 0x28f   : > { %v1716_v53 = vsel %vm1709_vm11, %v1368_v42, %v1562_v29  ;;  %v1750_v52 = vsel %vm1742_vm12, %v1717_v51, %v1466_v2  ;;  %v895_v2 = vsel %vm864_vm7, %v2998_v44, -inf }
 0x290   : > { %2249 = vrcp.f32 %v1226_v43  ;;  %v1749_v1 = vsel %vm1742_vm12, %v1716_v53, %v1464_v56  ;;  %v2246_v0 = vpop.eup %2245  ;;  %1679 = vmax.xlane.f32.xlu1 %v1630_v32  ;;  %1677 = vmax.xlane.f32.xlu0 %v1629_v34  ;;  %v1346_v53 = vsel %vm2521_vm6, %v3007_v15, inf  ;;  %v1345_v34 = vsel %vm2521_vm6, %v2998_v44, inf }
 0x291   : > { %v2248_v24 = vpop.eup %2247  ;;  %v1232_v38 = vadd.f32 1.0, %v2246_v0  ;;  %v1660_v59 = vpop.xlane.xlu1 %1659 }
 0x292   : > { %v1658_v42 = vpop.xlane.xlu0 %1657  ;;  %v1231_v9 = vadd.f32 1.0, %v2248_v24  ;;  %v1783_v45 = vsel %vm1775_vm13, %v1750_v52, %v1660_v59 }
 0x293   : > { %v1782_v43 = vsel %vm1775_vm13, %v1749_v1, %v1658_v42  ;;  %2251 = vrcp.f32 %v1232_v38  ;;  %v1442_v42 = vsel %vm2521_vm6, %v3007_v15, -inf }
 0x294   : > { %2253 = vrcp.f32 %v1231_v9  ;;  %951 = vmax.xlane.f32.xlu1 %v896_v19  ;;  %949 = vmax.xlane.f32.xlu0 %v895_v2  ;;  %v1441_v9 = vsel %vm2521_vm6, %v2998_v44, -inf }
 0x295   : > { %v3019_v56 = vpop.xlane.xlu1 %915 }
 0x296   : > { %v3021_v29 = vpop.xlane.xlu0 %913  ;;  %v1134_v32 = vsub.f32 0.0, %v3019_v56  ;;  %vm974_vm0 = vcmp.ge.f32.partialorder %v2668_v6, %v3019_v56 }
 0x297   : > { %v1133_v51 = vsub.f32 0.0, %v3021_v29  ;;  %vm973_vm2 = vcmp.ge.f32.partialorder %v2664_v5, %v3021_v29 }
 0x298   : > { %v1171_v52 = vmul.f32 1.442695, %v1134_v32  ;;  %1401 = vmin.xlane.f32.xlu1 %v1346_v53  ;;  %1399 = vmin.xlane.f32.xlu0 %v1345_v34  ;;  %v1539_v34 = vsel %vm2546_vm10, %v2998_v44, inf }
 0x299   : > { %v1169_v1 = vmul.f32 1.442695, %v1133_v51  ;;  %v1366_v24 = vpop.xlane.xlu1 %1365 }
 0x29a   : > { %v2250_v0 = vpop.eup %2249  ;;  %v1364_v38 = vpop.xlane.xlu0 %1363  ;;  %2255 = vpow2.f32 %v1171_v52 }
 0x29b   : > { %v3033_v59 = vsel %vm1808_vm14, %v2957_v8, %v2250_v0  ;;  %2257 = vpow2.f32 %v1169_v1  ;;  %v1540_v8 = vsel %vm2546_vm10, %v3007_v15, inf }
 0x29c   : > { %3866 = vst [vmem:[#allocation5_spill] sm:$0xff] %v3033_v59  ;;  %1497 = vmax.xlane.f32.xlu1 %v1442_v42  ;;  %1495 = vmax.xlane.f32.xlu0 %v1441_v9  ;;  %v3055_v42 = vadd.f32 %v2519_v12, %v2690_v18 }
 0x29d   : > { %v2252_v19 = vpop.eup %2251  ;;  %v1462_v2 = vpop.xlane.xlu1 %1461 }
 0x29e   : > { %v1460_v32 = vpop.xlane.xlu0 %1459  ;;  %v2254_v51 = vpop.eup %2253  ;;  %v3042_v53 = vsel %vm1808_vm14, %v1783_v45, %v2252_v19  ;;  %v3059_v45 = vadd.f32 %v2519_v12, %v2694_v20 }
 0x29f   : > { %3867 = vst [vmem:[#allocation6_spill] sm:$0xff] %v3042_v53  ;;  %v3051_v52 = vsel %vm1808_vm14, %v1782_v43, %v2254_v51  ;;  %v1636_v43 = vsel %vm2546_vm10, %v3007_v15, -inf  ;;  %v1635_v51 = vsel %vm2546_vm10, %v2998_v44, -inf }
 0x2a0   : > { %3868 = vst [vmem:[#allocation7_spill] sm:$0xff] %v3051_v52  ;;  %1595 = vmin.xlane.f32.xlu1 %v1540_v8  ;;  %1593 = vmin.xlane.f32.xlu0 %v1539_v34  ;;  %v894_v35 = vsel %vm864_vm7, %v3059_v45, -inf }
 0x2a1   : > { %v1560_v1 = vpop.xlane.xlu1 %1559 }
 0x2a2   : > { %v1558_v0 = vpop.xlane.xlu0 %1557  ;;  %v1715_v9 = vsel %vm1709_vm11, %v1366_v24, %v1560_v1 }
 0x2a3   : > { %v1714_v19 = vsel %vm1709_vm11, %v1364_v38, %v1558_v0  ;;  %v1748_v8 = vsel %vm1742_vm12, %v1715_v9, %v1462_v2  ;;  %v893_v2 = vsel %vm864_vm7, %v3055_v42, -inf }
 0x2a4   : > { %v1747_v18 = vsel %vm1742_vm12, %v1714_v19, %v1460_v32  ;;  %v2256_v34 = vpop.eup %2255  ;;  %1691 = vmax.xlane.f32.xlu1 %v1636_v43  ;;  %1689 = vmax.xlane.f32.xlu0 %v1635_v51  ;;  %v1343_v51 = vsel %vm2521_vm6, %v3055_v42, inf }
 0x2a5   : > { %v2258_v20 = vpop.eup %2257  ;;  %v1230_v52 = vadd.f32 1.0, %v2256_v34  ;;  %v1656_v24 = vpop.xlane.xlu1 %1655 }
 0x2a6   : > { %v1654_v1 = vpop.xlane.xlu0 %1653  ;;  %v1229_v38 = vadd.f32 1.0, %v2258_v20  ;;  %v1781_v0 = vsel %vm1775_vm13, %v1748_v8, %v1656_v24  ;;  %v1440_v20 = vsel %vm2521_vm6, %v3059_v45, -inf  ;;  %v1439_v24 = vsel %vm2521_vm6, %v3055_v42, -inf }
 0x2a7   : > { %v1780_v53 = vsel %vm1775_vm13, %v1747_v18, %v1654_v1  ;;  %2259 = vrcp.f32 %v1230_v52  ;;  %v1344_v52 = vsel %vm2521_vm6, %v3059_v45, inf }
 0x2a8   : > { %2261 = vrcp.f32 %v1229_v38  ;;  %947 = vmax.xlane.f32.xlu1 %v894_v35  ;;  %945 = vmax.xlane.f32.xlu0 %v893_v2 }
 0x2a9   : > { %v3079_v32 = vpop.xlane.xlu1 %927 }
 0x2aa   : > { %v3081_v9 = vpop.xlane.xlu0 %925  ;;  %v1140_v19 = vsub.f32 0.0, %v3079_v32  ;;  %vm980_vm4 = vcmp.ge.f32.partialorder %v2714_v28, %v3079_v32 }
 0x2ab   : > { %v1139_v43 = vsub.f32 0.0, %v3081_v9 }
 0x2ac   : > { %v1183_v8 = vmul.f32 1.442695, %v1140_v19  ;;  %1397 = vmin.xlane.f32.xlu1 %v1344_v52  ;;  %1395 = vmin.xlane.f32.xlu0 %v1343_v51  ;;  %v1538_v52 = vsel %vm2546_vm10, %v3059_v45, inf  ;;  %v1537_v51 = vsel %vm2546_vm10, %v3055_v42, inf }
 0x2ad   : > { %v1181_v18 = vmul.f32 1.442695, %v1139_v43  ;;  %v1378_v35 = vpop.xlane.xlu1 %1377 }
 0x2ae   : > { %v1376_v34 = vpop.xlane.xlu0 %1375  ;;  %2263 = vpow2.f32 %v1183_v8 }
 0x2af   : > { %2265 = vpow2.f32 %v1181_v18 }
 0x2b0   : > { %1493 = vmax.xlane.f32.xlu1 %v1440_v20  ;;  %1491 = vmax.xlane.f32.xlu0 %v1439_v24 }
 0x2b1   : > { %v2260_v1 = vpop.eup %2259  ;;  %v1474_v38 = vpop.xlane.xlu1 %1473 }
 0x2b2   : > { %v1472_v2 = vpop.xlane.xlu0 %1471  ;;  %v2262_v19 = vpop.eup %2261  ;;  %v3098_v43 = vsel %vm1808_vm14, %v1781_v0, %v2260_v1  ;;  %v1634_v1 = vsel %vm2546_vm10, %v3059_v45, -inf }
 0x2b3   : > { %3869 = vst [vmem:[#allocation8_spill] sm:$0xff] %v3098_v43  ;;  %v3107_v8 = vsel %vm1808_vm14, %v1780_v53, %v2262_v19  ;;  %v1633_v43 = vsel %vm2546_vm10, %v3055_v42, -inf  ;;  %v3119_v53 = vadd.f32 %v2766_v39, %v2519_v12  ;;  %v3123_v19 = vadd.f32 %v2776_v61, %v2519_v12 }
 0x2b4   : > { %3870 = vst [vmem:[#allocation9_spill] sm:$0xff] %v3107_v8  ;;  %1591 = vmin.xlane.f32.xlu1 %v1538_v52  ;;  %1589 = vmin.xlane.f32.xlu0 %v1537_v51 }
 0x2b5   : > { %v1572_v18 = vpop.xlane.xlu1 %1571  ;;  %3871 = vst [vmem:[#allocation10_spill] sm:$0xff] %v3119_v53  ;;  %v900_v61 = vsel %vm864_vm7, %v3123_v19, -inf }
 0x2b6   : > { %v1570_v20 = vpop.xlane.xlu0 %1569  ;;  %v1721_v24 = vsel %vm1709_vm11, %v1378_v35, %v1572_v18 }
 0x2b7   : > { %v1720_v0 = vsel %vm1709_vm11, %v1376_v34, %v1570_v20  ;;  %v1754_v35 = vsel %vm1742_vm12, %v1721_v24, %v1474_v38  ;;  %v899_v38 = vsel %vm864_vm7, %v3119_v53, -inf }
 0x2b8   : > { %v1753_v34 = vsel %vm1742_vm12, %v1720_v0, %v1472_v2  ;;  %v2264_v52 = vpop.eup %2263  ;;  %1687 = vmax.xlane.f32.xlu1 %v1634_v1  ;;  %1685 = vmax.xlane.f32.xlu0 %v1633_v43  ;;  %v1350_v0 = vsel %vm2521_vm6, %v3123_v19, inf  ;;  %v1349_v1 = vsel %vm2521_vm6, %v3119_v53, inf }
 0x2b9   : > { %v2266_v51 = vpop.eup %2265  ;;  %v1236_v18 = vadd.f32 1.0, %v2264_v52  ;;  %v1668_v20 = vpop.xlane.xlu1 %1667 }
 0x2ba   : > { %v1666_v8 = vpop.xlane.xlu0 %1665  ;;  %v1235_v59 = vadd.f32 1.0, %v2266_v51  ;;  %v1787_v30 = vsel %vm1775_vm13, %v1754_v35, %v1668_v20  ;;  %v1446_v51 = vsel %vm2521_vm6, %v3123_v19, -inf }
 0x2bb   : > { %v1786_v39 = vsel %vm1775_vm13, %v1753_v34, %v1666_v8  ;;  %2267 = vrcp.f32 %v1236_v18  ;;  %v1445_v18 = vsel %vm2521_vm6, %v3119_v53, -inf }
 0x2bc   : > { %2269 = vrcp.f32 %v1235_v59  ;;  %959 = vmax.xlane.f32.xlu1 %v900_v61  ;;  %957 = vmax.xlane.f32.xlu0 %v899_v38 }
 0x2bd   : > { %v3135_v2 = vpop.xlane.xlu1 %923 }
 0x2be   : > { %v3137_v43 = vpop.xlane.xlu0 %921  ;;  %v1138_v24 = vsub.f32 0.0, %v3135_v2 }
 0x2bf   : > { %v1137_v8 = vsub.f32 0.0, %v3137_v43 }
 0x2c0   : > { %v1179_v35 = vmul.f32 1.442695, %v1138_v24  ;;  %1409 = vmin.xlane.f32.xlu1 %v1350_v0  ;;  %1407 = vmin.xlane.f32.xlu0 %v1349_v1  ;;  %v1544_v0 = vsel %vm2546_vm10, %v3123_v19, inf  ;;  %v1543_v1 = vsel %vm2546_vm10, %v3119_v53, inf }
 0x2c1   : > { %v1177_v59 = vmul.f32 1.442695, %v1137_v8  ;;  %v1374_v34 = vpop.xlane.xlu1 %1373 }
 0x2c2   : > { %v1372_v52 = vpop.xlane.xlu0 %1371  ;;  %2271 = vpow2.f32 %v1179_v35 }
 0x2c3   : > { %2273 = vpow2.f32 %v1177_v59 }
 0x2c4   : > { %1505 = vmax.xlane.f32.xlu1 %v1446_v51  ;;  %1503 = vmax.xlane.f32.xlu0 %v1445_v18  ;;  %v3167_v18 = vadd.f32 %v2519_v12, %v2774_v60 }
 0x2c5   : > { %v2268_v20 = vpop.eup %2267  ;;  %v1470_v61 = vpop.xlane.xlu1 %1469 }
 0x2c6   : > { %v1468_v38 = vpop.xlane.xlu0 %1467  ;;  %v2270_v24 = vpop.eup %2269  ;;  %v3154_v8 = vsel %vm1808_vm14, %v1787_v30, %v2268_v20  ;;  %3874 = vst [vmem:[#allocation13_spill] sm:$0xff] %v3167_v18  ;;  %v3171_v30 = vadd.f32 %v2519_v12, %v2778_v62 }
 0x2c7   : > { %3872 = vst [vmem:[#allocation11_spill] sm:$0xff] %v3154_v8  ;;  %v3163_v35 = vsel %vm1808_vm14, %v1786_v39, %v2270_v24  ;;  %v1640_v39 = vsel %vm2546_vm10, %v3123_v19, -inf  ;;  %v1639_v24 = vsel %vm2546_vm10, %v3119_v53, -inf }
 0x2c8   : > { %3873 = vst [vmem:[#allocation12_spill] sm:$0xff] %v3163_v35  ;;  %1603 = vmin.xlane.f32.xlu1 %v1544_v0  ;;  %1601 = vmin.xlane.f32.xlu0 %v1543_v1  ;;  %3875 = vst [vmem:[#allocation14_spill] sm:$0xff] %v3171_v30  ;;  %v898_v63 = vsel %vm864_vm7, %v3171_v30, -inf }
 0x2c9   : > { %v1568_v59 = vpop.xlane.xlu1 %1567 }
 0x2ca   : > { %v1566_v51 = vpop.xlane.xlu0 %1565  ;;  %v1719_v20 = vsel %vm1709_vm11, %v1374_v34, %v1568_v59 }
 0x2cb   : > { %v1718_v8 = vsel %vm1709_vm11, %v1372_v52, %v1566_v51  ;;  %v1752_v0 = vsel %vm1742_vm12, %v1719_v20, %v1470_v61  ;;  %v897_v61 = vsel %vm864_vm7, %v3167_v18, -inf }
 0x2cc   : > { %v1751_v60 = vsel %vm1742_vm12, %v1718_v8, %v1468_v38  ;;  %v2272_v1 = vpop.eup %2271  ;;  %1699 = vmax.xlane.f32.xlu1 %v1640_v39  ;;  %1697 = vmax.xlane.f32.xlu0 %v1639_v24  ;;  %v1348_v24 = vsel %vm2521_vm6, %v3171_v30, inf }
 0x2cd   : > { %v2274_v12 = vpop.eup %2273  ;;  %v1234_v62 = vadd.f32 1.0, %v2272_v1  ;;  %v1664_v34 = vpop.xlane.xlu1 %1663 }
 0x2ce   : > { %v1662_v59 = vpop.xlane.xlu0 %1661  ;;  %v1233_v52 = vadd.f32 1.0, %v2274_v12  ;;  %v1785_v51 = vsel %vm1775_vm13, %v1752_v0, %v1664_v34  ;;  %v1347_v0 = vsel %vm2521_vm6, %v3167_v18, inf  ;;  %v1443_v34 = vsel %vm2521_vm6, %v3167_v18, -inf }
 0x2cf   : > { %v1784_v35 = vsel %vm1775_vm13, %v1751_v60, %v1662_v59  ;;  %2275 = vrcp.f32 %v1234_v62  ;;  %v1444_v62 = vsel %vm2521_vm6, %v3171_v30, -inf }
 0x2d0   : > { %2277 = vrcp.f32 %v1233_v52  ;;  %955 = vmax.xlane.f32.xlu1 %v898_v63  ;;  %953 = vmax.xlane.f32.xlu0 %v897_v61 }
 0x2d1   : > { %v3191_v38 = vpop.xlane.xlu1 %935 }
 0x2d2   : > { %v3193_v8 = vpop.xlane.xlu0 %933  ;;  %v1144_v20 = vsub.f32 0.0, %v3191_v38 }
 0x2d3   : > { %v1143_v39 = vsub.f32 0.0, %v3193_v8 }
 0x2d4   : > { %v1191_v60 = vmul.f32 1.442695, %v1144_v20  ;;  %1405 = vmin.xlane.f32.xlu1 %v1348_v24  ;;  %1403 = vmin.xlane.f32.xlu0 %v1347_v0  ;;  %v1542_v24 = vsel %vm2546_vm10, %v3171_v30, inf  ;;  %v1541_v0 = vsel %vm2546_vm10, %v3167_v18, inf }
 0x2d5   : > { %v1189_v1 = vmul.f32 1.442695, %v1143_v39  ;;  %v1386_v63 = vpop.xlane.xlu1 %1385 }
 0x2d6   : > { %v1384_v12 = vpop.xlane.xlu0 %1383  ;;  %2279 = vpow2.f32 %v1191_v60 }
 0x2d7   : > { %2281 = vpow2.f32 %v1189_v1 }
 0x2d8   : > { %1501 = vmax.xlane.f32.xlu1 %v1444_v62  ;;  %1499 = vmax.xlane.f32.xlu0 %v1443_v34 }
 0x2d9   : > { %v2276_v59 = vpop.eup %2275  ;;  %v1482_v52 = vpop.xlane.xlu1 %1481 }
 0x2da   : > { %v1480_v61 = vpop.xlane.xlu0 %1479  ;;  %v2278_v20 = vpop.eup %2277  ;;  %v3210_v39 = vsel %vm1808_vm14, %v1785_v51, %v2276_v59  ;;  %v1638_v59 = vsel %vm2546_vm10, %v3171_v30, -inf }
 0x2db   : > { %3876 = vst [vmem:[#allocation15_spill] sm:$0xff] %v3210_v39  ;;  %v3219_v60 = vsel %vm1808_vm14, %v1784_v35, %v2278_v20  ;;  %v1637_v39 = vsel %vm2546_vm10, %v3167_v18, -inf  ;;  %v2359_v35 = vld [vmem:[%s3852_s4] ss:$0 sm:$0xff] }
 0x2dc   : > { %3877 = vst [vmem:[#allocation16_spill] sm:$0xff] %v3219_v60  ;;  %1599 = vmin.xlane.f32.xlu1 %v1542_v24  ;;  %1597 = vmin.xlane.f32.xlu0 %v1541_v0  ;;  %v3233_v20 = vadd.f32 %v2359_v35, %v2853_v36  ;;  %v3236_v24 = vadd.f32 %v2359_v35, %v2863_v49 }
 0x2dd   : > { %v1580_v1 = vpop.xlane.xlu1 %1579 }
 0x2de   : > { %v1578_v62 = vpop.xlane.xlu0 %1577  ;;  %v1725_v34 = vsel %vm1709_vm11, %v1386_v63, %v1580_v1  ;;  %3878 = vst [vmem:[#allocation17_spill] sm:$0xff] %v3233_v20  ;;  %v904_v49 = vsel %vm864_vm7, %v3236_v24, -inf }
 0x2df   : > { %v1724_v51 = vsel %vm1709_vm11, %v1384_v12, %v1578_v62  ;;  %v1758_v63 = vsel %vm1742_vm12, %v1725_v34, %v1482_v52  ;;  %v903_v52 = vsel %vm864_vm7, %v3233_v20, -inf  ;;  %v1354_v34 = vsel %vm2521_vm6, %v3236_v24, inf }
 0x2e0   : > { %v1757_v12 = vsel %vm1742_vm12, %v1724_v51, %v1480_v61  ;;  %v2280_v0 = vpop.eup %2279  ;;  %1695 = vmax.xlane.f32.xlu1 %v1638_v59  ;;  %1693 = vmax.xlane.f32.xlu0 %v1637_v39  ;;  %v1353_v51 = vsel %vm2521_vm6, %v3233_v20, inf }
 0x2e1   : > { %v2282_v1 = vpop.eup %2281  ;;  %v1240_v62 = vadd.f32 1.0, %v2280_v0  ;;  %v1676_v60 = vpop.xlane.xlu1 %1675  ;;  %v1450_v0 = vsel %vm2521_vm6, %v3236_v24, -inf }
 0x2e2   : > { %v1674_v18 = vpop.xlane.xlu0 %1673  ;;  %v1239_v30 = vadd.f32 1.0, %v2282_v1  ;;  %v1791_v53 = vsel %vm1775_vm13, %v1758_v63, %v1676_v60  ;;  %v1449_v1 = vsel %vm2521_vm6, %v3233_v20, -inf }
 0x2e3   : > { %v1790_v36 = vsel %vm1775_vm13, %v1757_v12, %v1674_v18  ;;  %2283 = vrcp.f32 %v1240_v62 }
 0x2e4   : > { %2285 = vrcp.f32 %v1239_v30  ;;  %967 = vmax.xlane.f32.xlu1 %v904_v49  ;;  %965 = vmax.xlane.f32.xlu0 %v903_v52 }
 0x2e5   : > { %v3248_v61 = vpop.xlane.xlu1 %931 }
 0x2e6   : > { %v3250_v39 = vpop.xlane.xlu0 %929  ;;  %v1142_v60 = vsub.f32 0.0, %v3248_v61 }
 0x2e7   : > { %v1141_v18 = vsub.f32 0.0, %v3250_v39 }
 0x2e8   : > { %v1187_v59 = vmul.f32 1.442695, %v1142_v60  ;;  %1417 = vmin.xlane.f32.xlu1 %v1354_v34  ;;  %1415 = vmin.xlane.f32.xlu0 %v1353_v51  ;;  %v3273_v51 = vadd.f32 %v2359_v35, %v2868_v55 }
 0x2e9   : > { %v1185_v30 = vmul.f32 1.442695, %v1141_v18  ;;  %v1382_v63 = vpop.xlane.xlu1 %1381  ;;  %v3267_v18 = vadd.f32 %v2359_v35, %v2861_v41 }
 0x2ea   : > { %v1380_v12 = vpop.xlane.xlu0 %1379  ;;  %2287 = vpow2.f32 %v1187_v59  ;;  %v1548_v59 = vsel %vm2546_vm10, %v3236_v24, inf  ;;  %v902_v35 = vsel %vm864_vm7, %v3273_v51, -inf }
 0x2eb   : > { %2289 = vpow2.f32 %v1185_v30  ;;  %v1547_v30 = vsel %vm2546_vm10, %v3233_v20, inf  ;;  %v1352_v20 = vsel %vm2521_vm6, %v3273_v51, inf  ;;  %v1641_v14 = vsel %vm2546_vm10, %v3267_v18, -inf }
 0x2ec   : > { %1513 = vmax.xlane.f32.xlu1 %v1450_v0  ;;  %1511 = vmax.xlane.f32.xlu0 %v1449_v1 }
 0x2ed   : > { %v2284_v62 = vpop.eup %2283  ;;  %v1478_v49 = vpop.xlane.xlu1 %1477 }
 0x2ee   : > { %v1476_v52 = vpop.xlane.xlu0 %1475  ;;  %v2286_v60 = vpop.eup %2285  ;;  %v3270_v34 = vsel %vm1808_vm14, %v1791_v53, %v2284_v62  ;;  %v901_v62 = vsel %vm864_vm7, %v3267_v18, -inf }
 0x2ef   : > { %3879 = vst [vmem:[#allocation18_spill] sm:$0xff] %v3270_v34  ;;  %v3282_v0 = vsel %vm1808_vm14, %v1790_v36, %v2286_v60 }
 0x2f0   : > { %3880 = vst [vmem:[#allocation19_spill] sm:$0xff] %v3282_v0  ;;  %1611 = vmin.xlane.f32.xlu1 %v1548_v59  ;;  %1609 = vmin.xlane.f32.xlu0 %v1547_v30 }
 0x2f1   : > { %v1576_v41 = vpop.xlane.xlu1 %1575 }
 0x2f2   : > { %v1574_v1 = vpop.xlane.xlu0 %1573  ;;  %v1723_v53 = vsel %vm1709_vm11, %v1382_v63, %v1576_v41 }
 0x2f3   : > { %v1722_v55 = vsel %vm1709_vm11, %v1380_v12, %v1574_v1  ;;  %v1756_v34 = vsel %vm1742_vm12, %v1723_v53, %v1478_v49  ;;  %v1351_v49 = vsel %vm2521_vm6, %v3267_v18, inf }
 0x2f4   : > { %v1755_v36 = vsel %vm1742_vm12, %v1722_v55, %v1476_v52  ;;  %v2288_v60 = vpop.eup %2287  ;;  %963 = vmax.xlane.f32.xlu1 %v902_v35  ;;  %961 = vmax.xlane.f32.xlu0 %v901_v62  ;;  %v1448_v35 = vsel %vm2521_vm6, %v3273_v51, -inf  ;;  %v1447_v62 = vsel %vm2521_vm6, %v3267_v18, -inf  ;;  %vm976_vm6 = vcmp.ge.f32.partialorder %v2630_v58, %v2966_v10 }
 0x2f5   : > { %v2290_v59 = vpop.eup %2289  ;;  %v1238_v30 = vadd.f32 1.0, %v2288_v60  ;;  %v1672_v63 = vpop.xlane.xlu1 %1671  ;;  %v1033_v58 = vsel %vm3355_vm5, %v3338_v33, 128.0  ;;  %vm1008_vm15 = vmand %vm864_vm7, %vm976_vm6  ;;  %vm979_vm6 = vcmp.ge.f32.partialorder %v2710_v27, %v3081_v9 }
 0x2f6   : > { %v1670_v41 = vpop.xlane.xlu0 %1669  ;;  %v1237_v12 = vadd.f32 1.0, %v2290_v59  ;;  %v1789_v1 = vsel %vm1775_vm13, %v1756_v34, %v1672_v63  ;;  %v1545_v63 = vsel %vm2546_vm10, %v3267_v18, inf  ;;  %v1040_v22 = vsel %vm1008_vm15, %v3338_v33, 128.0  ;;  %vm1005_vm5 = vmand %vm864_vm7, %vm973_vm2 }
 0x2f7   : > { %v1788_v0 = vsel %vm1775_vm13, %v1755_v36, %v1670_v41  ;;  %2291 = vrcp.f32 %v1238_v30  ;;  %v1546_v30 = vsel %vm2546_vm10, %v3273_v51, inf  ;;  %vm3407_vm15 = vmand %vm864_vm7, %vm979_vm6  ;;  %vm984_vm2 = vcmp.ge.f32.partialorder %v2798_v4, %v3191_v38 }
 0x2f8   : > { %2293 = vrcp.f32 %v1237_v12  ;;  %1413 = vmin.xlane.f32.xlu1 %v1352_v20  ;;  %1411 = vmin.xlane.f32.xlu0 %v1351_v49  ;;  %vm982_vm6 = vcmp.ge.f32.partialorder %v2836_v26, %v3248_v61 }
 0x2f9   : > { %v3302_v52 = vpop.xlane.xlu1 %943 }
 0x2fa   : > { %v3304_v53 = vpop.xlane.xlu0 %941  ;;  %v1148_v34 = vsub.f32 0.0, %v3302_v52 }
 0x2fb   : > { %v1147_v55 = vsub.f32 0.0, %v3304_v53 }
 0x2fc   : > { %v1199_v36 = vmul.f32 1.442695, %v1148_v34  ;;  %1509 = vmax.xlane.f32.xlu1 %v1448_v35  ;;  %1507 = vmax.xlane.f32.xlu0 %v1447_v62  ;;  %v1036_v35 = vsel %vm1004_vm3, %v3338_v33, 128.0  ;;  %v1035_v62 = vsel %vm1003_vm1, %v3338_v33, 128.0  ;;  %vm1007_vm1 = vmand %vm864_vm7, %vm975_vm9  ;;  %vm978_vm9 = vcmp.ge.f32.partialorder %v2752_v47, %v3135_v2 }
 0x2fd   : > { %v1197_v60 = vmul.f32 1.442695, %v1147_v55  ;;  %v1394_v20 = vpop.xlane.xlu1 %1393  ;;  %v1642_v55 = vsel %vm2546_vm10, %v3273_v51, -inf  ;;  %vm1006_vm3 = vmand %vm864_vm7, %vm974_vm0  ;;  %vm977_vm0 = vcmp.ge.f32.partialorder %v2748_v46, %v3137_v43 }
 0x2fe   : > { %v3314_v59 = vpop.xlane.xlu0 %1391  ;;  %2295 = vpow2.f32 %v1199_v36 }
 0x2ff   : > { %2297 = vpow2.f32 %v1197_v60 }
 0x300   : > { %1607 = vmin.xlane.f32.xlu1 %v1546_v30  ;;  %1605 = vmin.xlane.f32.xlu0 %v1545_v63  ;;  %v1034_v30 = vsel %vm1002_vm8, %v3338_v33, 128.0  ;;  %v1039_v63 = vsel %vm1007_vm1, %v3338_v33, 128.0  ;;  %vm3398_vm8 = vmand %vm864_vm7, %vm980_vm4  ;;  %vm983_vm4 = vcmp.ge.f32.partialorder %v2794_v3, %v3193_v8 }
 0x301   : > { %v2292_v13 = vpop.eup %2291  ;;  %v1490_v41 = vpop.xlane.xlu1 %1489  ;;  %vm3431_vm1 = vmand %vm864_vm7, %vm978_vm9  ;;  %vm981_vm9 = vcmp.ge.f32.partialorder %v2832_v25, %v3250_v39 }
 0x302   : > { %v3326_v12 = vpop.xlane.xlu0 %1487  ;;  %v2294_v49 = vpop.eup %2293  ;;  %v3329_v34 = vsel %vm1808_vm14, %v1789_v1, %v2292_v13  ;;  %v1038_v13 = vsel %vm1006_vm3, %v3338_v33, 128.0  ;;  %vm1009_vm3 = vmand %vm864_vm7, %vm977_vm0  ;;  %v1042_v4 = vsel %vm3431_vm1, %v3338_v33, 128.0  ;;  %vm988_vm0 = vcmp.ge.f32.partialorder %v2891_v21, %v3302_v52 }
 0x303   : > { %v3343_v17 = vsel %vm1808_vm14, %v1788_v0, %v2294_v49  ;;  %v1037_v49 = vsel %vm1005_vm5, %v3338_v33, 128.0  ;;  %v1041_v38 = vsel %vm1009_vm3, %v3338_v33, 128.0  ;;  %vm1016_vm5 = vmand %vm864_vm7, %vm984_vm2  ;;  %vm987_vm2 = vcmp.ge.f32.partialorder %v2887_v16, %v3304_v53 }
 0x304   : > { %1703 = vmax.xlane.f32.xlu1 %v1642_v55  ;;  %1701 = vmax.xlane.f32.xlu0 %v1641_v14  ;;  %vm1013_vm1 = vmand %vm864_vm7, %vm981_vm9 }
 0x305   : > { %v1588_v54 = vpop.xlane.xlu1 %1587  ;;  %vm3489_vm3 = vmand %vm864_vm7, %vm988_vm0 }
 0x306   : > { %v1586_v1 = vpop.xlane.xlu0 %1585  ;;  %v1729_v5 = vsel %vm1709_vm11, %v1394_v20, %v1588_v54 }
 0x307   : > { %v1728_v29 = vsel %vm1709_vm11, %v3314_v59, %v1586_v1  ;;  %v1762_v27 = vsel %vm1742_vm12, %v1729_v5, %v1490_v41  ;;  %v1052_v5 = vsel %vm3489_vm3, %v3338_v33, 128.0 }
 0x308   : > { %v2296_v31 = vpop.eup %2295  ;;  %1071 = vmin.xlane.f32.xlu1 %v1036_v35  ;;  %1069 = vmin.xlane.f32.xlu0 %v1035_v62  ;;  %v1761_v59 = vsel %vm1742_vm12, %v1728_v29, %v3326_v12  ;;  %v1044_v35 = vsel %vm3398_vm8, %v3338_v33, 128.0  ;;  %v1043_v62 = vsel %vm3407_vm15, %v3338_v33, 128.0  ;;  %vm1015_vm8 = vmand %vm864_vm7, %vm983_vm4 }
 0x309   : > { %v2298_v40 = vpop.eup %2297  ;;  %v1244_v48 = vadd.f32 1.0, %v2296_v31  ;;  %v1684_v7 = vpop.xlane.xlu1 %1683  ;;  %v1047_v26 = vsel %vm1015_vm8, %v3338_v33, 128.0  ;;  %vm3473_vm15 = vmand %vm864_vm7, %vm982_vm6 }
 0x30a   : > { %v1682_v36 = vpop.xlane.xlu0 %1681  ;;  %v1243_v60 = vadd.f32 1.0, %v2298_v40  ;;  %v1795_v20 = vsel %vm1775_vm13, %v1762_v27, %v1684_v7 }
 0x30b   : > { %2299 = vrcp.f32 %v1244_v48  ;;  %v1794_v54 = vsel %vm1775_vm13, %v1761_v59, %v1682_v36  ;;  %v1048_v36 = vsel %vm1016_vm5, %v3338_v33, 128.0  ;;  %vm1019_vm5 = vmand %vm864_vm7, %vm987_vm2 }
 0x30c   : > { %2301 = vrcp.f32 %v1243_v60  ;;  %1067 = vmin.xlane.f32.xlu1 %v1034_v30  ;;  %1065 = vmin.xlane.f32.xlu0 %v1033_v58  ;;  %v1046_v58 = vsel %vm3473_vm15, %v3338_v33, 128.0 }
 0x30d   : > { %v3377_v57 = vpop.xlane.xlu1 %939 }
 0x30e   : > { %v3379_v10 = vpop.xlane.xlu0 %937  ;;  %vm986_vm4 = vcmp.ge.f32.partialorder %v2940_v50, %v3377_v57  ;;  %v1051_v50 = vsel %vm1019_vm5, %v3338_v33, 128.0  ;;  %v1146_v23 = vsub.f32 0.0, %v3377_v57  ;;  %v3897_v57 = vld [vmem:[#allocation3_spill] sm:$0xff] }
 0x30f   : > { %vm985_vm6 = vcmp.ge.f32.partialorder %v2936_v37, %v3379_v10  ;;  %vm1018_vm8 = vmand %vm864_vm7, %vm986_vm4 }
 0x310   : > { %1079 = vmin.xlane.f32.xlu1 %v1040_v22  ;;  %1077 = vmin.xlane.f32.xlu0 %v1039_v63  ;;  %v1045_v22 = vsel %vm1013_vm1, %v3338_v33, 128.0  ;;  %vm1017_vm15 = vmand %vm864_vm7, %vm985_vm6 }
 0x311   : > { %v1390_v6 = vpop.xlane.xlu1 %1389  ;;  %v1049_v29 = vsel %vm1017_vm15, %v3338_v33, 128.0 }
 0x312   : > { %v1388_v56 = vpop.xlane.xlu0 %1387 }
 0x314   : > { %1075 = vmin.xlane.f32.xlu1 %v1038_v13  ;;  %1073 = vmin.xlane.f32.xlu0 %v1037_v49 }
 0x315   : > { %v2300_v9 = vpop.eup %2299  ;;  %v1486_v55 = vpop.xlane.xlu1 %1485 }
 0x316   : > { %v1484_v14 = vpop.xlane.xlu0 %1483  ;;  %v2302_v41 = vpop.eup %2301  ;;  %v3418_v1 = vsel %vm1808_vm14, %v1795_v20, %v2300_v9 }
 0x317   : > { %v3436_v0 = vsel %vm1808_vm14, %v1794_v54, %v2302_v41 }
 0x318   : > { %1087 = vmin.xlane.f32.xlu1 %v1044_v35  ;;  %1085 = vmin.xlane.f32.xlu0 %v1043_v62 }
 0x319   : > { %v1584_v47 = vpop.xlane.xlu1 %1583 }
 0x31a   : > { %v1582_v2 = vpop.xlane.xlu0 %1581  ;;  %v1727_v31 = vsel %vm1709_vm11, %v1390_v6, %v1584_v47 }
 0x31b   : > { %v1726_v40 = vsel %vm1709_vm11, %v1388_v56, %v1582_v2  ;;  %v1760_v46 = vsel %vm1742_vm12, %v1727_v31, %v1486_v55  ;;  %v1050_v56 = vsel %vm1018_vm8, %v3338_v33, 128.0 }
 0x31c   : > { %v1759_v43 = vsel %vm1742_vm12, %v1726_v40, %v1484_v14  ;;  %1083 = vmin.xlane.f32.xlu1 %v1042_v4  ;;  %1081 = vmin.xlane.f32.xlu0 %v1041_v38 }
 0x31d   : > { %v1680_v3 = vpop.xlane.xlu1 %1679 }
 0x31e   : > { %v1678_v8 = vpop.xlane.xlu0 %1677  ;;  %v3464_v48 = vsel %vm1775_vm13, %v1760_v46, %v1680_v3 }
 0x31f   : > { %v3467_v7 = vsel %vm1775_vm13, %v1759_v43, %v1678_v8 }
 0x320   : > { %1095 = vmin.xlane.f32.xlu1 %v1048_v36  ;;  %1093 = vmin.xlane.f32.xlu0 %v1047_v26 }
 0x321   : > { %v952_v25 = vpop.xlane.xlu1 %951 }
 0x322   : > { %v950_v39 = vpop.xlane.xlu0 %949  ;;  %v1152_v60 = vsub.f32 0.0, %v952_v25  ;;  %vm992_vm9 = vcmp.ge.f32.partialorder %v3007_v15, %v952_v25 }
 0x323   : > { %v1151_v30 = vsub.f32 0.0, %v950_v39  ;;  %vm991_vm0 = vcmp.ge.f32.partialorder %v2998_v44, %v950_v39  ;;  %vm1024_vm1 = vmand %vm864_vm7, %vm992_vm9 }
 0x324   : > { %v1207_v16 = vmul.f32 1.442695, %v1152_v60  ;;  %1091 = vmin.xlane.f32.xlu1 %v1046_v58  ;;  %1089 = vmin.xlane.f32.xlu0 %v1045_v22  ;;  %vm1023_vm2 = vmand %vm864_vm7, %vm991_vm0  ;;  %v1056_v28 = vsel %vm1024_vm1, %v3338_v33, 128.0 }
 0x325   : > { %v1205_v52 = vmul.f32 1.442695, %v1151_v30  ;;  %v1402_v53 = vpop.xlane.xlu1 %1401  ;;  %v1055_v27 = vsel %vm1023_vm2, %v3338_v33, 128.0 }
 0x326   : > { %v1400_v63 = vpop.xlane.xlu0 %1399  ;;  %2303 = vpow2.f32 %v1207_v16 }
 0x327   : > { %2305 = vpow2.f32 %v1205_v52 }
 0x328   : > { %1103 = vmin.xlane.f32.xlu1 %v1052_v5  ;;  %1101 = vmin.xlane.f32.xlu0 %v1051_v50 }
 0x329   : > { %v1498_v37 = vpop.xlane.xlu1 %1497 }
 0x32a   : > { %v1496_v6 = vpop.xlane.xlu0 %1495 }
 0x32c   : > { %1099 = vmin.xlane.f32.xlu1 %v1050_v56  ;;  %1097 = vmin.xlane.f32.xlu0 %v1049_v29 }
 0x32d   : > { %v1596_v15 = vpop.xlane.xlu1 %1595 }
 0x32e   : > { %v1594_v13 = vpop.xlane.xlu0 %1593  ;;  %v1733_v49 = vsel %vm1709_vm11, %v1402_v53, %v1596_v15  ;;  %v3893_v15 = vld [vmem:[#allocation10_spill] sm:$0xff] }
 0x32f   : > { %v1732_v44 = vsel %vm1709_vm11, %v1400_v63, %v1594_v13  ;;  %v1766_v32 = vsel %vm1742_vm12, %v1733_v49, %v1498_v37 }
 0x330   : > { %v1765_v9 = vsel %vm1742_vm12, %v1732_v44, %v1496_v6  ;;  %v2304_v20 = vpop.eup %2303  ;;  %1111 = vmin.xlane.f32.xlu1 %v1056_v28  ;;  %1109 = vmin.xlane.f32.xlu0 %v1055_v27 }
 0x331   : > { %v2306_v59 = vpop.eup %2305  ;;  %v1248_v55 = vadd.f32 1.0, %v2304_v20  ;;  %v1692_v14 = vpop.xlane.xlu1 %1691 }
 0x332   : > { %v1690_v41 = vpop.xlane.xlu0 %1689  ;;  %v1247_v54 = vadd.f32 1.0, %v2306_v59  ;;  %v1799_v35 = vsel %vm1775_vm13, %v1766_v32, %v1692_v14 }
 0x333   : > { %v1798_v62 = vsel %vm1775_vm13, %v1765_v9, %v1690_v41  ;;  %2307 = vrcp.f32 %v1248_v55 }
 0x334   : > { %2309 = vrcp.f32 %v1247_v54 }
 0x335   : > { %v948_v12 = vpop.xlane.xlu1 %947 }
 0x336   : > { %v946_v47 = vpop.xlane.xlu0 %945  ;;  %vm990_vm3 = vcmp.ge.f32.partialorder %v3059_v45, %v948_v12  ;;  %v1150_v2 = vsub.f32 0.0, %v948_v12 }
 0x337   : > { %vm989_vm4 = vcmp.ge.f32.partialorder %v3055_v42, %v946_v47  ;;  %v1149_v31 = vsub.f32 0.0, %v946_v47  ;;  %vm1022_vm5 = vmand %vm864_vm7, %vm990_vm3 }
 0x338   : > { %v1203_v40 = vmul.f32 1.442695, %v1150_v2  ;;  %v1054_v38 = vsel %vm1022_vm5, %v3338_v33, 128.0  ;;  %vm1021_vm6 = vmand %vm864_vm7, %vm989_vm4 }
 0x339   : > { %v1201_v4 = vmul.f32 1.442695, %v1149_v31  ;;  %v1398_v46 = vpop.xlane.xlu1 %1397  ;;  %1107 = vmin.xlane.f32.xlu1 %v1054_v38  ;;  %v1053_v43 = vsel %vm1021_vm6, %v3338_v33, 128.0 }
 0x33a   : > { %v1396_v3 = vpop.xlane.xlu0 %1395  ;;  %2311 = vpow2.f32 %v1203_v40  ;;  %1105 = vmin.xlane.f32.xlu0 %v1053_v43 }
 0x33b   : > { %2313 = vpow2.f32 %v1201_v4 }
 0x33d   : > { %v2308_v42 = vpop.eup %2307  ;;  %v1494_v45 = vpop.xlane.xlu1 %1493 }
 0x33e   : > { %v1492_v8 = vpop.xlane.xlu0 %1491  ;;  %v2310_v36 = vpop.eup %2309  ;;  %v3532_v26 = vsel %vm1808_vm14, %v1799_v35, %v2308_v42 }
 0x33f   : > { %v3535_v61 = vsel %vm1808_vm14, %v1798_v62, %v2310_v36  ;;  %v3894_v36 = vld [vmem:[#allocation14_spill] sm:$0xff] }
 0x341   : > { %v1592_v25 = vpop.xlane.xlu1 %1591 }
 0x342   : > { %v1590_v39 = vpop.xlane.xlu0 %1589  ;;  %v1731_v60 = vsel %vm1709_vm11, %v1398_v46, %v1592_v25 }
 0x343   : > { %v1730_v30 = vsel %vm1709_vm11, %v1396_v3, %v1590_v39  ;;  %v1764_v58 = vsel %vm1742_vm12, %v1731_v60, %v1494_v45  ;;  %v3895_v39 = vld [vmem:[#allocation13_spill] sm:$0xff] }
 0x344   : > { %v1763_v22 = vsel %vm1742_vm12, %v1730_v30, %v1492_v8  ;;  %v2312_v21 = vpop.eup %2311 }
 0x345   : > { %v2314_v16 = vpop.eup %2313  ;;  %v1246_v52 = vadd.f32 1.0, %v2312_v21  ;;  %v1688_v53 = vpop.xlane.xlu1 %1687 }
 0x346   : > { %v1686_v63 = vpop.xlane.xlu0 %1685  ;;  %v1245_v5 = vadd.f32 1.0, %v2314_v16  ;;  %v1797_v50 = vsel %vm1775_vm13, %v1764_v58, %v1688_v53 }
 0x347   : > { %v1796_v37 = vsel %vm1775_vm13, %v1763_v22, %v1686_v63  ;;  %2315 = vrcp.f32 %v1246_v52 }
 0x348   : > { %2317 = vrcp.f32 %v1245_v5 }
 0x349   : > { %v960_v6 = vpop.xlane.xlu1 %959 }
 0x34a   : > { %v958_v56 = vpop.xlane.xlu0 %957  ;;  %vm996_vm8 = vcmp.ge.f32.partialorder %v3123_v19, %v960_v6  ;;  %v1156_v29 = vsub.f32 0.0, %v960_v6 }
 0x34b   : > { %vm995_vm9 = vcmp.ge.f32.partialorder %v3893_v15, %v958_v56  ;;  %v1155_v13 = vsub.f32 0.0, %v958_v56  ;;  %vm1028_vm15 = vmand %vm864_vm7, %vm996_vm8 }
 0x34c   : > { %v1215_v49 = vmul.f32 1.442695, %v1156_v29  ;;  %v1060_v28 = vsel %vm1028_vm15, %v3338_v33, 128.0  ;;  %vm1027_vm0 = vmand %vm864_vm7, %vm995_vm9 }
 0x34d   : > { %v1213_v44 = vmul.f32 1.442695, %v1155_v13  ;;  %v1410_v27 = vpop.xlane.xlu1 %1409  ;;  %1119 = vmin.xlane.f32.xlu1 %v1060_v28  ;;  %v1059_v32 = vsel %vm1027_vm0, %v3338_v33, 128.0 }
 0x34e   : > { %v1408_v9 = vpop.xlane.xlu0 %1407  ;;  %2319 = vpow2.f32 %v1215_v49  ;;  %1117 = vmin.xlane.f32.xlu0 %v1059_v32 }
 0x34f   : > { %2321 = vpow2.f32 %v1213_v44 }
 0x351   : > { %v2316_v19 = vpop.eup %2315  ;;  %v1506_v20 = vpop.xlane.xlu1 %1505 }
 0x352   : > { %v1504_v59 = vpop.xlane.xlu0 %1503  ;;  %v2318_v55 = vpop.eup %2317  ;;  %v3552_v14 = vsel %vm1808_vm14, %v1797_v50, %v2316_v19 }
 0x353   : > { %v3555_v41 = vsel %vm1808_vm14, %v1796_v37, %v2318_v55 }
 0x355   : > { %v1604_v54 = vpop.xlane.xlu1 %1603 }
 0x356   : > { %v1602_v35 = vpop.xlane.xlu0 %1601  ;;  %v1737_v62 = vsel %vm1709_vm11, %v1410_v27, %v1604_v54 }
 0x357   : > { %v1736_v12 = vsel %vm1709_vm11, %v1408_v9, %v1602_v35  ;;  %v1770_v47 = vsel %vm1742_vm12, %v1737_v62, %v1506_v20  ;;  %v3896_v62 = vld [vmem:[#allocation17_spill] sm:$0xff] }
 0x358   : > { %v1769_v2 = vsel %vm1742_vm12, %v1736_v12, %v1504_v59  ;;  %v2320_v31 = vpop.eup %2319  ;;  %v1643_v11 = vsel %vm2546_vm10, %v3896_v62, -inf }
 0x359   : > { %v2322_v40 = vpop.eup %2321  ;;  %v1252_v4 = vadd.f32 1.0, %v2320_v31  ;;  %v1700_v38 = vpop.xlane.xlu1 %1699 }
 0x35a   : > { %v1698_v46 = vpop.xlane.xlu0 %1697  ;;  %v1251_v43 = vadd.f32 1.0, %v2322_v40  ;;  %v1803_v3 = vsel %vm1775_vm13, %v1770_v47, %v1700_v38 }
 0x35b   : > { %v1802_v42 = vsel %vm1775_vm13, %v1769_v2, %v1698_v46  ;;  %2323 = vrcp.f32 %v1252_v4 }
 0x35c   : > { %2325 = vrcp.f32 %v1251_v43 }
 0x35d   : > { %v956_v45 = vpop.xlane.xlu1 %955 }
 0x35e   : > { %v954_v8 = vpop.xlane.xlu0 %953  ;;  %vm994_vm1 = vcmp.ge.f32.partialorder %v3894_v36, %v956_v45  ;;  %v1154_v25 = vsub.f32 0.0, %v956_v45 }
 0x35f   : > { %vm993_vm2 = vcmp.ge.f32.partialorder %v3895_v39, %v954_v8  ;;  %v1153_v60 = vsub.f32 0.0, %v954_v8  ;;  %vm1026_vm3 = vmand %vm864_vm7, %vm994_vm1 }
 0x360   : > { %v1211_v30 = vmul.f32 1.442695, %v1154_v25  ;;  %v1058_v22 = vsel %vm1026_vm3, %v3338_v33, 128.0  ;;  %vm1025_vm4 = vmand %vm864_vm7, %vm993_vm2 }
 0x361   : > { %v1209_v58 = vmul.f32 1.442695, %v1153_v60  ;;  %v1406_v21 = vpop.xlane.xlu1 %1405  ;;  %1115 = vmin.xlane.f32.xlu1 %v1058_v22  ;;  %v1057_v16 = vsel %vm1025_vm4, %v3338_v33, 128.0 }
 0x362   : > { %v1404_v52 = vpop.xlane.xlu0 %1403  ;;  %2327 = vpow2.f32 %v1211_v30  ;;  %1113 = vmin.xlane.f32.xlu0 %v1057_v16 }
 0x363   : > { %2329 = vpow2.f32 %v1209_v58 }
 0x365   : > { %v2324_v53 = vpop.eup %2323  ;;  %v1502_v63 = vpop.xlane.xlu1 %1501 }
 0x366   : > { %v1500_v5 = vpop.xlane.xlu0 %1499  ;;  %v2326_v50 = vpop.eup %2325  ;;  %v3572_v37 = vsel %vm1808_vm14, %v1803_v3, %v2324_v53 }
 0x367   : > { %v3575_v6 = vsel %vm1808_vm14, %v1802_v42, %v2326_v50 }
 0x369   : > { %v1600_v56 = vpop.xlane.xlu1 %1599 }
 0x36a   : > { %v1598_v29 = vpop.xlane.xlu0 %1597  ;;  %v1735_v15 = vsel %vm1709_vm11, %v1406_v21, %v1600_v56 }
 0x36b   : > { %v1734_v13 = vsel %vm1709_vm11, %v1404_v52, %v1598_v29  ;;  %v1768_v49 = vsel %vm1742_vm12, %v1735_v15, %v1502_v63 }
 0x36c   : > { %v1767_v44 = vsel %vm1742_vm12, %v1734_v13, %v1500_v5  ;;  %v2328_v28 = vpop.eup %2327 }
 0x36d   : > { %v2330_v27 = vpop.eup %2329  ;;  %v1250_v32 = vadd.f32 1.0, %v2328_v28  ;;  %v1696_v9 = vpop.xlane.xlu1 %1695 }
 0x36e   : > { %v1694_v19 = vpop.xlane.xlu0 %1693  ;;  %v1249_v20 = vadd.f32 1.0, %v2330_v27  ;;  %v1801_v59 = vsel %vm1775_vm13, %v1768_v49, %v1696_v9 }
 0x36f   : > { %v1800_v55 = vsel %vm1775_vm13, %v1767_v44, %v1694_v19  ;;  %2331 = vrcp.f32 %v1250_v32 }
 0x370   : > { %2333 = vrcp.f32 %v1249_v20 }
 0x371   : > { %v3583_v54 = vpop.xlane.xlu1 %967 }
 0x372   : > { %v3585_v35 = vpop.xlane.xlu0 %965  ;;  %vm1000_vm5 = vcmp.ge.f32.partialorder %v3236_v24, %v3583_v54 }
 0x373   : > { %vm999_vm6 = vcmp.ge.f32.partialorder %v3896_v62, %v3585_v35  ;;  %vm1032_vm8 = vmand %vm864_vm7, %vm1000_vm5 }
 0x374   : > { %v1064_v12 = vsel %vm1032_vm8, %v3338_v33, 128.0  ;;  %vm1031_vm9 = vmand %vm864_vm7, %vm999_vm6 }
 0x375   : > { %v1418_v47 = vpop.xlane.xlu1 %1417  ;;  %1127 = vmin.xlane.f32.xlu1 %v1064_v12  ;;  %v1063_v2 = vsel %vm1031_vm9, %v3338_v33, 128.0  ;;  %v1195_v12 = vmul.f32 1.442695, %v1146_v23 }
 0x376   : > { %v1416_v31 = vpop.xlane.xlu0 %1415  ;;  %1125 = vmin.xlane.f32.xlu0 %v1063_v2 }
 0x379   : > { %v2332_v40 = vpop.eup %2331  ;;  %v1514_v4 = vpop.xlane.xlu1 %1513 }
 0x37a   : > { %v1512_v38 = vpop.xlane.xlu0 %1511  ;;  %v2334_v46 = vpop.eup %2333  ;;  %v3598_v43 = vsel %vm1808_vm14, %v1801_v59, %v2332_v40  ;;  %v1145_v59 = vsub.f32 0.0, %v3379_v10 }
 0x37b   : > { %v3601_v3 = vsel %vm1808_vm14, %v1800_v55, %v2334_v46 }
 0x37d   : > { %v1612_v42 = vpop.xlane.xlu1 %1611 }
 0x37e   : > { %v1610_v45 = vpop.xlane.xlu0 %1609  ;;  %v1741_v8 = vsel %vm1709_vm11, %v1418_v47, %v1612_v42  ;;  %v3898_v47 = vld [vmem:[#allocation2_spill] sm:$0xff] }
 0x37f   : > { %v1740_v36 = vsel %vm1709_vm11, %v1416_v31, %v1610_v45  ;;  %v3606_v25 = vsel %vm1742_vm12, %v1741_v8, %v1514_v4  ;;  %v1193_v31 = vmul.f32 1.442695, %v1145_v59  ;;  %v3899_v8 = vld [vmem:[#allocation5_spill] sm:$0xff] }
 0x380   : > { %v3609_v39 = vsel %vm1742_vm12, %v1740_v36, %v1512_v38 }
 0x381   : > { %v964_v60 = vpop.xlane.xlu1 %963 }
 0x382   : > { %v962_v30 = vpop.xlane.xlu0 %961  ;;  %vm998_vm15 = vcmp.ge.f32.partialorder %v3273_v51, %v964_v60  ;;  %v1158_v58 = vsub.f32 0.0, %v964_v60  ;;  %v3900_v60 = vld [vmem:[#allocation4_spill] sm:$0xff] }
 0x383   : > { %vm997_vm0 = vcmp.ge.f32.partialorder %v3267_v18, %v962_v30  ;;  %v1157_v22 = vsub.f32 0.0, %v962_v30  ;;  %vm1030_vm1 = vmand %vm864_vm7, %vm998_vm15  ;;  %v1644_v18 = vsel %vm2546_vm10, %v3236_v24, -inf  ;;  %vm1874_vm10 = vcmask 48128  }
 0x384   : > { %v1219_v21 = vmul.f32 1.442695, %v1158_v58  ;;  %v1062_v16 = vsel %vm1030_vm1, %v3338_v33, 128.0  ;;  %vm1029_vm2 = vmand %vm864_vm7, %vm997_vm0  ;;  %vm1841_vm7 = vcmask 39936  }
 0x385   : > { %v1217_v52 = vmul.f32 1.442695, %v1157_v22  ;;  %v1414_v53 = vpop.xlane.xlu1 %1413  ;;  %1123 = vmin.xlane.f32.xlu1 %v1062_v16  ;;  %v1061_v63 = vsel %vm1029_vm2, %v3338_v33, 128.0 }
 0x386   : > { %v1412_v5 = vpop.xlane.xlu0 %1411  ;;  %2335 = vpow2.f32 %v1219_v21  ;;  %1121 = vmin.xlane.f32.xlu0 %v1061_v63 }
 0x387   : > { %2337 = vpow2.f32 %v1217_v52 }
 0x389   : > { %v1510_v51 = vpop.xlane.xlu1 %1509  ;;  %1707 = vmax.xlane.f32.xlu1 %v1644_v18  ;;  %v3901_v18 = vld [vmem:[#allocation6_spill] sm:$0xff] }
 0x38a   : > { %v1508_v50 = vpop.xlane.xlu0 %1507  ;;  %1705 = vmax.xlane.f32.xlu0 %v1643_v11  ;;  %v3902_v11 = vld [vmem:[#allocation7_spill] sm:$0xff] }
 0x38d   : > { %v1608_v56 = vpop.xlane.xlu1 %1607 }
 0x38e   : > { %v1606_v29 = vpop.xlane.xlu0 %1605  ;;  %v1739_v33 = vsel %vm1709_vm11, %v1414_v53, %v1608_v56 }
 0x38f   : > { %v1738_v15 = vsel %vm1709_vm11, %v1412_v5, %v1606_v29  ;;  %v1772_v13 = vsel %vm1742_vm12, %v1739_v33, %v1510_v51  ;;  %vm1907_vm11 = vcmask 56320  }
 0x390   : > { %v1771_v49 = vsel %vm1742_vm12, %v1738_v15, %v1508_v50  ;;  %v2336_v24 = vpop.eup %2335  ;;  %vm1940_vm12 = vcmask 64512  }
 0x391   : > { %v2338_v44 = vpop.eup %2337  ;;  %v1254_v28 = vadd.f32 1.0, %v2336_v24  ;;  %v1704_v27 = vpop.xlane.xlu1 %1703 }
 0x392   : > { %v1702_v32 = vpop.xlane.xlu0 %1701  ;;  %v1253_v9 = vadd.f32 1.0, %v2338_v44  ;;  %v1805_v19 = vsel %vm1775_vm13, %v1772_v13, %v1704_v27 }
 0x393   : > { %v1804_v20 = vsel %vm1775_vm13, %v1771_v49, %v1702_v32  ;;  %2339 = vrcp.f32 %v1254_v28  ;;  %v3903_v28 = vld [vmem:[#allocation8_spill] sm:$0xff]  ;;  %v3904_v32 = vld [vmem:[#allocation9_spill] sm:$0xff] }
 0x394   : > { %2341 = vrcp.f32 %v1253_v9 }
 0x395   : > { %v1072_v55 = vpop.xlane.xlu1 %1071  ;;  %2343 = vpow2.f32 %v1195_v12 }
 0x396   : > { %v1070_v62 = vpop.xlane.xlu0 %1069  ;;  %v1845_v10 = vsel %vm1841_vm7, %v3897_v57, %v1072_v55  ;;  %2345 = vpow2.f32 %v1193_v31 }
 0x397   : > { %v1844_v2 = vsel %vm1841_vm7, %v3898_v47, %v1070_v62  ;;  %v1878_v40 = vsel %vm1874_vm10, %v1845_v10, 0.0  ;;  %v3905_v10 = vld [vmem:[#allocation11_spill] sm:$0xff] }
 0x398   : > { %v1877_v4 = vsel %vm1874_vm10, %v1844_v2, 0.0  ;;  %v1911_v38 = vsel %vm1907_vm11, %v1878_v40, 0.0  ;;  %v3906_v2 = vld [vmem:[#allocation12_spill] sm:$0xff] }
 0x399   : > { %v1910_v46 = vsel %vm1907_vm11, %v1877_v4, 0.0  ;;  %1944 = vst.msk [vmem:[%s3637_s17 + $0x18] sm:$0xff] %vm1940_vm12, %v1911_v38  ;;  %v1068_v42 = vpop.xlane.xlu1 %1067 }
 0x39a   : > { %1943 = vst.msk [vmem:[%s3637_s17 + $0x10] sm:$0xff] %vm1940_vm12, %v1910_v46  ;;  %v1066_v45 = vpop.xlane.xlu0 %1065  ;;  %v1843_v36 = vsel %vm1841_vm7, %v3899_v8, %v1068_v42 }
 0x39b   : > { %v1842_v30 = vsel %vm1841_vm7, %v3900_v60, %v1066_v45  ;;  %v1876_v58 = vsel %vm1874_vm10, %v1843_v36, 0.0  ;;  %v3907_v60 = vld [vmem:[#allocation15_spill] sm:$0xff] }
 0x39c   : > { %v1875_v22 = vsel %vm1874_vm10, %v1842_v30, 0.0  ;;  %v1909_v21 = vsel %vm1907_vm11, %v1876_v58, 0.0  ;;  %v3908_v58 = vld [vmem:[#allocation16_spill] sm:$0xff] }
 0x39d   : > { %v1908_v16 = vsel %vm1907_vm11, %v1875_v22, 0.0  ;;  %v2340_v52 = vpop.eup %2339  ;;  %1942 = vst.msk [vmem:[%s3637_s17 + $0x8] sm:$0xff] %vm1940_vm12, %v1909_v21  ;;  %v1080_v53 = vpop.xlane.xlu1 %1079 }
 0x39e   : > { %1941 = vst.msk [vmem:[%s3637_s17] sm:$0xff] %vm1940_vm12, %v1908_v16  ;;  %v1078_v63 = vpop.xlane.xlu0 %1077  ;;  %v2342_v5 = vpop.eup %2341  ;;  %v1849_v51 = vsel %vm1841_vm7, %v3901_v18, %v1080_v53  ;;  %v3668_v56 = vsel %vm1808_vm14, %v1805_v19, %v2340_v52  ;;  %v3909_v18 = vld [vmem:[#allocation18_spill] sm:$0xff] }
 0x39f   : > { %v1848_v50 = vsel %vm1841_vm7, %v3902_v11, %v1078_v63  ;;  %v1882_v29 = vsel %vm1874_vm10, %v1849_v51, 0.0  ;;  %v3673_v15 = vsel %vm1808_vm14, %v1804_v20, %v2342_v5  ;;  %v2344_v20 = vpop.eup %2343  ;;  %v3910_v11 = vld [vmem:[#allocation19_spill] sm:$0xff] }
 0x3a0   : > { %v1881_v33 = vsel %vm1874_vm10, %v1848_v50, 0.0  ;;  %v1915_v13 = vsel %vm1907_vm11, %v1882_v29, 0.0  ;;  %v2346_v62 = vpop.eup %2345  ;;  %v1242_v40 = vadd.f32 1.0, %v2344_v20 }
 0x3a1   : > { %v1914_v49 = vsel %vm1907_vm11, %v1881_v33, 0.0  ;;  %1948 = vst.msk [vmem:[%s3637_s17 + $0x38] sm:$0xff] %vm1940_vm12, %v1915_v13  ;;  %v1076_v24 = vpop.xlane.xlu1 %1075  ;;  %v1241_v46 = vadd.f32 1.0, %v2346_v62 }
 0x3a2   : > { %1947 = vst.msk [vmem:[%s3637_s17 + $0x30] sm:$0xff] %vm1940_vm12, %v1914_v49  ;;  %v1074_v44 = vpop.xlane.xlu0 %1073  ;;  %v1847_v27 = vsel %vm1841_vm7, %v3903_v28, %v1076_v24  ;;  %2347 = vrcp.f32 %v1242_v40 }
 0x3a3   : > { %v1846_v23 = vsel %vm1841_vm7, %v3904_v32, %v1074_v44  ;;  %v1880_v9 = vsel %vm1874_vm10, %v1847_v27, 0.0  ;;  %2349 = vrcp.f32 %v1241_v46 }
 0x3a4   : > { %v1879_v19 = vsel %vm1874_vm10, %v1846_v23, 0.0  ;;  %v1913_v59 = vsel %vm1907_vm11, %v1880_v9, 0.0 }
 0x3a5   : > { %v1912_v55 = vsel %vm1907_vm11, %v1879_v19, 0.0  ;;  %1946 = vst.msk [vmem:[%s3637_s17 + $0x28] sm:$0xff] %vm1940_vm12, %v1913_v59  ;;  %v1088_v12 = vpop.xlane.xlu1 %1087 }
 0x3a6   : > { %1945 = vst.msk [vmem:[%s3637_s17 + $0x20] sm:$0xff] %vm1940_vm12, %v1912_v55  ;;  %v1086_v57 = vpop.xlane.xlu0 %1085  ;;  %v1853_v47 = vsel %vm1841_vm7, %v3905_v10, %v1088_v12 }
 0x3a7   : > { %v1852_v31 = vsel %vm1841_vm7, %v3906_v2, %v1086_v57  ;;  %v1886_v4 = vsel %vm1874_vm10, %v1853_v47, 0.0 }
 0x3a8   : > { %v1885_v38 = vsel %vm1874_vm10, %v1852_v31, 0.0  ;;  %v1919_v42 = vsel %vm1907_vm11, %v1886_v4, 0.0 }
 0x3a9   : > { %v1918_v45 = vsel %vm1907_vm11, %v1885_v38, 0.0  ;;  %1952 = vst.msk [vmem:[%s3637_s17 + $0x58] sm:$0xff] %vm1940_vm12, %v1919_v42  ;;  %v1084_v8 = vpop.xlane.xlu1 %1083 }
 0x3aa   : > { %1951 = vst.msk [vmem:[%s3637_s17 + $0x50] sm:$0xff] %vm1940_vm12, %v1918_v45  ;;  %v1082_v36 = vpop.xlane.xlu0 %1081  ;;  %v1851_v30 = vsel %vm1841_vm7, %v3907_v60, %v1084_v8 }
 0x3ab   : > { %v1850_v22 = vsel %vm1841_vm7, %v3908_v58, %v1082_v36  ;;  %v1884_v21 = vsel %vm1874_vm10, %v1851_v30, 0.0 }
 0x3ac   : > { %v1883_v16 = vsel %vm1874_vm10, %v1850_v22, 0.0  ;;  %v1917_v52 = vsel %vm1907_vm11, %v1884_v21, 0.0  ;;  %v2348_v20 = vpop.eup %2347 }
 0x3ad   : > { %v1916_v53 = vsel %vm1907_vm11, %v1883_v16, 0.0  ;;  %1950 = vst.msk [vmem:[%s3637_s17 + $0x48] sm:$0xff] %vm1940_vm12, %v1917_v52  ;;  %v1096_v63 = vpop.xlane.xlu1 %1095  ;;  %v2350_v55 = vpop.eup %2349 }
 0x3ae   : > { %1949 = vst.msk [vmem:[%s3637_s17 + $0x40] sm:$0xff] %vm1940_vm12, %v1916_v53  ;;  %v1094_v5 = vpop.xlane.xlu0 %1093  ;;  %v1857_v51 = vsel %vm1841_vm7, %v3909_v18, %v1096_v63 }
 0x3af   : > { %v1856_v50 = vsel %vm1841_vm7, %v3910_v11, %v1094_v5  ;;  %v1890_v29 = vsel %vm1874_vm10, %v1857_v51, 0.0 }
 0x3b0   : > { %v1889_v33 = vsel %vm1874_vm10, %v1856_v50, 0.0  ;;  %v1923_v13 = vsel %vm1907_vm11, %v1890_v29, 0.0 }
 0x3b1   : > { %v1922_v49 = vsel %vm1907_vm11, %v1889_v33, 0.0  ;;  %1956 = vst.msk [vmem:[%s3637_s17 + $0x78] sm:$0xff] %vm1940_vm12, %v1923_v13  ;;  %v1092_v24 = vpop.xlane.xlu1 %1091 }
 0x3b2   : > { %1955 = vst.msk [vmem:[%s3637_s17 + $0x70] sm:$0xff] %vm1940_vm12, %v1922_v49  ;;  %v1090_v44 = vpop.xlane.xlu0 %1089  ;;  %v1855_v28 = vsel %vm1841_vm7, %v3329_v34, %v1092_v24 }
 0x3b3   : > { %v1854_v27 = vsel %vm1841_vm7, %v3343_v17, %v1090_v44  ;;  %v1888_v32 = vsel %vm1874_vm10, %v1855_v28, 0.0 }
 0x3b4   : > { %v1887_v23 = vsel %vm1874_vm10, %v1854_v27, 0.0  ;;  %v1921_v9 = vsel %vm1907_vm11, %v1888_v32, 0.0  ;;  %v1160_v32 = vsub.f32 0.0, %v3583_v54 }
 0x3b5   : > { %v1920_v19 = vsel %vm1907_vm11, %v1887_v23, 0.0  ;;  %1954 = vst.msk [vmem:[%s3637_s17 + $0x68] sm:$0xff] %vm1940_vm12, %v1921_v9  ;;  %v1104_v59 = vpop.xlane.xlu1 %1103 }
 0x3b6   : > { %1953 = vst.msk [vmem:[%s3637_s17 + $0x60] sm:$0xff] %vm1940_vm12, %v1920_v19  ;;  %v1102_v34 = vpop.xlane.xlu0 %1101  ;;  %v1861_v17 = vsel %vm1841_vm7, %v3418_v1, %v1104_v59  ;;  %v1826_v1 = vsel %vm1808_vm14, %v3464_v48, %v2348_v20  ;;  %v1223_v23 = vmul.f32 1.442695, %v1160_v32 }
 0x3b7   : > { %v1860_v62 = vsel %vm1841_vm7, %v3436_v0, %v1102_v34  ;;  %v1894_v12 = vsel %vm1874_vm10, %v1861_v17, 0.0  ;;  %v1825_v0 = vsel %vm1808_vm14, %v3467_v7, %v2350_v55 }
 0x3b8   : > { %v1893_v57 = vsel %vm1874_vm10, %v1860_v62, 0.0  ;;  %v1927_v10 = vsel %vm1907_vm11, %v1894_v12, 0.0  ;;  %2351 = vpow2.f32 %v1223_v23 }
 0x3b9   : > { %v1926_v47 = vsel %vm1907_vm11, %v1893_v57, 0.0  ;;  %1960 = vst.msk [vmem:[%s3637_s17 + $0x98] sm:$0xff] %vm1940_vm12, %v1927_v10  ;;  %v1100_v2 = vpop.xlane.xlu1 %1099 }
 0x3ba   : > { %1959 = vst.msk [vmem:[%s3637_s17 + $0x90] sm:$0xff] %vm1940_vm12, %v1926_v47  ;;  %v1098_v31 = vpop.xlane.xlu0 %1097  ;;  %v1859_v40 = vsel %vm1841_vm7, %v1826_v1, %v1100_v2 }
 0x3bb   : > { %v1858_v4 = vsel %vm1841_vm7, %v1825_v0, %v1098_v31  ;;  %v1892_v38 = vsel %vm1874_vm10, %v1859_v40, 0.0 }
 0x3bc   : > { %v1891_v46 = vsel %vm1874_vm10, %v1858_v4, 0.0  ;;  %v1925_v42 = vsel %vm1907_vm11, %v1892_v38, 0.0 }
 0x3bd   : > { %v1924_v45 = vsel %vm1907_vm11, %v1891_v46, 0.0  ;;  %1958 = vst.msk [vmem:[%s3637_s17 + $0x88] sm:$0xff] %vm1940_vm12, %v1925_v42  ;;  %v1112_v48 = vpop.xlane.xlu1 %1111 }
 0x3be   : > { %1957 = vst.msk [vmem:[%s3637_s17 + $0x80] sm:$0xff] %vm1940_vm12, %v1924_v45  ;;  %v1110_v7 = vpop.xlane.xlu0 %1109  ;;  %v1865_v8 = vsel %vm1841_vm7, %v3532_v26, %v1112_v48 }
 0x3bf   : > { %v1864_v36 = vsel %vm1841_vm7, %v3535_v61, %v1110_v7  ;;  %v1898_v60 = vsel %vm1874_vm10, %v1865_v8, 0.0 }
 0x3c0   : > { %v1897_v30 = vsel %vm1874_vm10, %v1864_v36, 0.0  ;;  %v1931_v58 = vsel %vm1907_vm11, %v1898_v60, 0.0 }
 0x3c1   : > { %v1930_v22 = vsel %vm1907_vm11, %v1897_v30, 0.0  ;;  %1964 = vst.msk [vmem:[%s3637_s17 + $0xb8] sm:$0xff] %vm1940_vm12, %v1931_v58 }
 0x3c2   : > { %1963 = vst.msk [vmem:[%s3637_s17 + $0xb0] sm:$0xff] %vm1940_vm12, %v1930_v22 }
 0x3c6   : > { %v1108_v21 = vpop.xlane.xlu1 %1107 }
 0x3c7   : > { %v1863_v26 = vsel %vm1841_vm7, %v3552_v14, %v1108_v21  ;;  %v1106_v16 = vpop.xlane.xlu0 %1105 }
 0x3c8   : > { %v1896_v61 = vsel %vm1874_vm10, %v1863_v26, 0.0  ;;  %v1862_v52 = vsel %vm1841_vm7, %v3555_v41, %v1106_v16 }
 0x3c9   : > { %v1929_v53 = vsel %vm1907_vm11, %v1896_v61, 0.0  ;;  %v1895_v63 = vsel %vm1874_vm10, %v1862_v52, 0.0 }
 0x3ca   : > { %1962 = vst.msk [vmem:[%s3637_s17 + $0xa8] sm:$0xff] %vm1940_vm12, %v1929_v53  ;;  %v1928_v5 = vsel %vm1907_vm11, %v1895_v63, 0.0 }
 0x3cb   : > { %1961 = vst.msk [vmem:[%s3637_s17 + $0xa0] sm:$0xff] %vm1940_vm12, %v1928_v5 }
 0x3da   : > { %v1120_v18 = vpop.xlane.xlu1 %1119 }
 0x3db   : > { %v1869_v14 = vsel %vm1841_vm7, %v3572_v37, %v1120_v18  ;;  %v1118_v51 = vpop.xlane.xlu0 %1117 }
 0x3dc   : > { %v1902_v11 = vsel %vm1874_vm10, %v1869_v14, 0.0  ;;  %v1868_v41 = vsel %vm1841_vm7, %v3575_v6, %v1118_v51 }
 0x3dd   : > { %v1935_v50 = vsel %vm1907_vm11, %v1902_v11, 0.0  ;;  %v1901_v29 = vsel %vm1874_vm10, %v1868_v41, 0.0 }
 0x3de   : > { %1968 = vst.msk [vmem:[%s3637_s17 + $0xd8] sm:$0xff] %vm1940_vm12, %v1935_v50  ;;  %v1934_v33 = vsel %vm1907_vm11, %v1901_v29, 0.0 }
 0x3df   : > { %1967 = vst.msk [vmem:[%s3637_s17 + $0xd0] sm:$0xff] %vm1940_vm12, %v1934_v33 }
 0x3ee   : > { %v1116_v13 = vpop.xlane.xlu1 %1115 }
 0x3ef   : > { %v1867_v37 = vsel %vm1841_vm7, %v3598_v43, %v1116_v13  ;;  %v1114_v49 = vpop.xlane.xlu0 %1113  ;;  %v1159_v43 = vsub.f32 0.0, %v3585_v35 }
 0x3f0   : > { %v1900_v24 = vsel %vm1874_vm10, %v1867_v37, 0.0  ;;  %v1866_v6 = vsel %vm1841_vm7, %v3601_v3, %v1114_v49  ;;  %v2352_v3 = vpop.eup %2351 }
 0x3f1   : > { %v1933_v44 = vsel %vm1907_vm11, %v1900_v24, 0.0  ;;  %v1899_v28 = vsel %vm1874_vm10, %v1866_v6, 0.0  ;;  %v1221_v9 = vmul.f32 1.442695, %v1159_v43  ;;  %v1256_v20 = vadd.f32 1.0, %v2352_v3 }
 0x3f2   : > { %1966 = vst.msk [vmem:[%s3637_s17 + $0xc8] sm:$0xff] %vm1940_vm12, %v1933_v44  ;;  %v1932_v27 = vsel %vm1907_vm11, %v1899_v28, 0.0 }
 0x3f3   : > { %1965 = vst.msk [vmem:[%s3637_s17 + $0xc0] sm:$0xff] %vm1940_vm12, %v1932_v27  ;;  %2353 = vpow2.f32 %v1221_v9 }
 0x3f4   : > { %2355 = vrcp.f32 %v1256_v20 }
 0x3fd   : > { %v2354_v19 = vpop.eup %2353 }
 0x3fe   : > { %v1255_v59 = vadd.f32 1.0, %v2354_v19  ;;  %v2356_v2 = vpop.eup %2355 }
 0x400   : > { %2357 = vrcp.f32 %v1255_v59 }
 0x402   : > { %v1128_v34 = vpop.xlane.xlu1 %1127 }
 0x403   : > { %v1126_v55 = vpop.xlane.xlu0 %1125 }
 0x40a   : > { %v2358_v31 = vpop.eup %2357 }
 0x412   : > { %v1124_v17 = vpop.xlane.xlu1 %1123 }
 0x413   : > { %v1871_v54 = vsel %vm1841_vm7, %v3668_v56, %v1124_v17  ;;  %v1122_v62 = vpop.xlane.xlu0 %1121 }
 0x414   : > { %v1904_v35 = vsel %vm1874_vm10, %v1871_v54, 0.0  ;;  %v1870_v12 = vsel %vm1841_vm7, %v3673_v15, %v1122_v62 }
 0x415   : > { %v1937_v57 = vsel %vm1907_vm11, %v1904_v35, 0.0  ;;  %v1903_v10 = vsel %vm1874_vm10, %v1870_v12, 0.0 }
 0x416   : > { %1970 = vst.msk [vmem:[%s3637_s17 + $0xe8] sm:$0xff] %vm1940_vm12, %v1937_v57  ;;  %v1936_v47 = vsel %vm1907_vm11, %v1903_v10, 0.0  ;;  %v1708_v1 = vpop.xlane.xlu1 %1707 }
 0x417   : > { %1969 = vst.msk [vmem:[%s3637_s17 + $0xe0] sm:$0xff] %vm1940_vm12, %v1936_v47  ;;  %v1807_v56 = vsel %vm1775_vm13, %v3606_v25, %v1708_v1  ;;  %v1706_v0 = vpop.xlane.xlu0 %1705 }
 0x418   : > { %v1840_v15 = vsel %vm1808_vm14, %v1807_v56, %v2356_v2  ;;  %v1806_v40 = vsel %vm1775_vm13, %v3609_v39, %v1706_v0 }
 0x419   : > { %v1873_v4 = vsel %vm1841_vm7, %v1840_v15, %v1128_v34  ;;  %v1839_v38 = vsel %vm1808_vm14, %v1806_v40, %v2358_v31 }
 0x41a   : > { %v1906_v46 = vsel %vm1874_vm10, %v1873_v4, 0.0  ;;  %v1872_v42 = vsel %vm1841_vm7, %v1839_v38, %v1126_v55 }
 0x41b   : > { %v1939_v45 = vsel %vm1907_vm11, %v1906_v46, 0.0  ;;  %v1905_v48 = vsel %vm1874_vm10, %v1872_v42, 0.0 }
 0x41c   : > { %1972 = vst.msk [vmem:[%s3637_s17 + $0xf8] sm:$0xff] %vm1940_vm12, %v1939_v45  ;;  %v1938_v25 = vsel %vm1907_vm11, %v1905_v48, 0.0 }
 0x41d   : > { %1971 = vst.msk [vmem:[%s3637_s17 + $0xf0] sm:$0xff] %vm1940_vm12, %v1938_v25 }
 0x41e PF: > { %s15_s18 = sadd.s32 1, %s2366_s18  }
 0x41f   : > { %p12_p4 = scmp.ge.s32.totalorder %s15_s18, 4  }
 0x421   :  { %14 = sbr.rel (!%p12_p4) target bundleno = 1 (0x1), region = 70 }

</bundles_post_ra>
